<compile_context>
chip_gen: v5e
topology: v5e:2x2
jax: 0.10.0
libtpu: 0.0.40
codegen_flags: <defaults>
</compile_context>

<pallas_src>
import functools

import numpy as np
import jax
import jax.numpy as jnp
from jax.experimental import pallas as pl
from jax.experimental.pallas import tpu as pltpu  # noqa: F401  (not needed at this size)

# ----------------------------- config --------------------------------------
BATCH = 2
IN_CHANS = 3
SPATIAL = 16
PATCH = 4
DIM = 32
DEPTH = 2
BACKBONE_CLASSES = 1000   # timm backbone num_classes before the extra head
N_CLASS = 5
CPAD = 128                # lane-dense padded class dimension for the output store


# ----------------------------- fused kernel --------------------------------
def _fused_kernel(patches_ref, shift_ref, pool_ref, pew_ref, pea_ref,
                  blk_ref, pww_ref, fwb_ref, out_ref, *, depth, n_l, dim):
    """Whole forward (all images) in one invocation:
    patch embed -> DEPTH ConvMixer blocks -> per-image avg pool -> folded classifier+head."""

    def mm(a, b):
        # bf16-native MXU; f32 accumulate.
        return jnp.dot(a.astype(jnp.bfloat16), b.astype(jnp.bfloat16),
                       preferred_element_type=jnp.float32)

    # Patch embedding: (NL, PK) @ (PK, DIM) -> +bias -> GELU -> BN (folded affine).
    pea = pea_ref[...]                                    # (3, DIM): bias, bn_scale, bn_shift
    h = mm(patches_ref[...], pew_ref[...]) + pea[0:1]
    h = jax.nn.gelu(h, approximate=True)
    h = h * pea[1:2] + pea[2:3]                           # (NL, DIM) f32

    shift_bf = shift_ref[...].astype(jnp.bfloat16)        # (9*NL, NL), 0/1 -> exact in bf16

    # ConvMixer blocks (unrolled at trace time).
    for d in range(depth):
        blk = blk_ref[d]                                  # (16, DIM) parameter slab
        dww = blk[0:9]                                    # per-tap depthwise weights (9, DIM)
        dwb, dws, dwt = blk[9:10], blk[10:11], blk[11:12]
        pwb, pws, pwt = blk[12:13], blk[13:14], blk[14:15]

        # Depthwise 3x3: ONE stacked matmul produces all 9 shifted copies, then the
        # per-channel weighted sum runs on the VPU over static row slices.
        taps = jnp.dot(shift_bf, h.astype(jnp.bfloat16),
                       preferred_element_type=jnp.float32)        # (9*NL, DIM)
        acc = taps[0:n_l] * dww[0:1]
        for k in range(1, 9):                                      # unrolled
            acc = acc + taps[k * n_l:(k + 1) * n_l] * dww[k:k + 1]
        acc = acc + dwb
        acc = jax.nn.gelu(acc, approximate=True)
        acc = acc * dws + dwt
        h = acc + h                                                # residual

        # Pointwise 1x1 conv -> GELU -> BN.
        z = mm(h, pww_ref[d]) + pwb
        z = jax.nn.gelu(z, approximate=True)
        h = z * pws + pwt

    # Per-image global average pool via constant pooling matrix (entries 1/L),
    # then folded classifier+head, lane-padded to CPAD.
    pooled = mm(pool_ref[...], h)                          # (N, DIM)
    fwb = fwb_ref[...]                                     # (DIM+1, CPAD)
    logits = mm(pooled, fwb[:dim]) + fwb[dim:dim + 1]      # (N, CPAD)
    out_ref[...] = logits.astype(out_ref.dtype)


# ----------------------------- constants -----------------------------------
def _stacked_shift(hp, wp, n):
    """(9*n*L, n*L) 0/1 matrix.  Rows [k*NL:(k+1)*NL] apply 3x3 tap k (zero padded,
    cross-correlation convention) block-diagonally per image; columns index the
    flattened (image, y*wp + x) activation rows."""
    L = hp * wp
    NL = n * L
    S = np.zeros((9, L, L), np.float32)
    for kdy in range(3):
        for kdx in range(3):
            k = kdy * 3 + kdx
            dy, dx = kdy - 1, kdx - 1
            for y in range(hp):
                for x in range(wp):
                    yi, xi = y + dy, x + dx
                    if 0 <= yi < hp and 0 <= xi < wp:
                        S[k, y * wp + x, yi * wp + xi] = 1.0
    out = np.zeros((9 * NL, NL), np.float32)
    for k in range(9):
        for b in range(n):
            out[k * NL + b * L:k * NL + (b + 1) * L, b * L:(b + 1) * L] = S[k]
    return jnp.asarray(out)


def _pool_mat(n, L):
    """(n, n*L) per-image global-average-pool matrix with the 1/L scale baked in."""
    P = np.zeros((n, n * L), np.float32)
    for b in range(n):
        P[b, b * L:(b + 1) * L] = 1.0 / L
    return jnp.asarray(P)


# ----------------------------- parameters ----------------------------------
def init_params(key):
    def normal(k, shape, scale=0.05):
        return scale * jax.random.normal(k, shape, dtype=jnp.float32)

    keys = iter(jax.random.split(key, 8 + DEPTH * 8))
    params = {
        "patch_w": normal(next(keys), (PATCH * PATCH * IN_CHANS, DIM)),
        "patch_b": normal(next(keys), (DIM,)),
        "patch_bn_s": 1.0 + normal(next(keys), (DIM,), 0.01),
        "patch_bn_t": normal(next(keys), (DIM,), 0.01),
        "blocks": [],
        "cls_w": normal(next(keys), (DIM, BACKBONE_CLASSES)),
        "cls_b": normal(next(keys), (BACKBONE_CLASSES,)),
        "head_w": normal(next(keys), (BACKBONE_CLASSES, N_CLASS)),
        "head_b": normal(next(keys), (N_CLASS,)),
    }
    for _ in range(DEPTH):
        params["blocks"].append({
            "dw_w": normal(next(keys), (9, DIM)),
            "dw_b": normal(next(keys), (DIM,)),
            "dw_bn_s": 1.0 + normal(next(keys), (DIM,), 0.01),
            "dw_bn_t": normal(next(keys), (DIM,), 0.01),
            "pw_w": normal(next(keys), (DIM, DIM)),
            "pw_b": normal(next(keys), (DIM,)),
            "pw_bn_s": 1.0 + normal(next(keys), (DIM,), 0.01),
            "pw_bn_t": normal(next(keys), (DIM,), 0.01),
        })
    return params


# ----------------------------- forward -------------------------------------
def image_model_forward(params, x_nchw):
    # NCHW (PyTorch convention) -> NHWC internally.
    x = jnp.transpose(x_nchw, (0, 2, 3, 1)).astype(jnp.float32)
    N, H, W, C = x.shape
    Hp, Wp = H // PATCH, W // PATCH
    L = Hp * Wp
    NL = N * L
    PK = PATCH * PATCH * C

    # Patch-embed conv (k=p, s=p) as im2col, batch folded into the row axis
    # (the whole forward runs in one kernel invocation).
    patches = (x.reshape(N, Hp, PATCH, Wp, PATCH, C)
                .transpose(0, 1, 3, 2, 4, 5)
                .reshape(NL, PK))

    shift = _stacked_shift(Hp, Wp, N)                       # (9*NL, NL) constant
    pool = _pool_mat(N, L)                                  # (N, NL) constant

    # Patch-embed affine slab: rows = bias, bn_scale, bn_shift.
    patch_aff = jnp.stack([params["patch_b"], params["patch_bn_s"], params["patch_bn_t"]])

    # Per-block slab: rows 0-8 dw_w, 9 dw_b, 10 dw_bn_s, 11 dw_bn_t,
    #                 12 pw_b, 13 pw_bn_s, 14 pw_bn_t, 15 padding.
    blk_rows, pw_ws = [], []
    for blk in params["blocks"]:
        rows = jnp.concatenate([
            blk["dw_w"],
            blk["dw_b"][None], blk["dw_bn_s"][None], blk["dw_bn_t"][None],
            blk["pw_b"][None], blk["pw_bn_s"][None], blk["pw_bn_t"][None],
            jnp.zeros((1, DIM), jnp.float32),
        ], axis=0)
        blk_rows.append(rows)
        pw_ws.append(blk["pw_w"])
    blk_slab = jnp.stack(blk_rows)                          # (DEPTH, 16, DIM)
    pww_slab = jnp.stack(pw_ws)                             # (DEPTH, DIM, DIM)

    # Fold backbone classifier (dim->1000) and extra head (1000->n_class) at trace
    # time (two plain linears, no activation between), pad to a lane-dense CPAD slab.
    fused_w = params["cls_w"] @ params["head_w"]                        # (DIM, N_CLASS)
    fused_b = params["cls_b"] @ params["head_w"] + params["head_b"]     # (N_CLASS,)
    fw = jnp.zeros((DIM, CPAD), jnp.float32).at[:, :N_CLASS].set(fused_w)
    fb = jnp.zeros((1, CPAD), jnp.float32).at[0, :N_CLASS].set(fused_b)
    fwb = jnp.concatenate([fw, fb], axis=0)                 # (DIM+1, CPAD)

    kern = functools.partial(_fused_kernel, depth=len(params["blocks"]), n_l=NL, dim=DIM)
    out = pl.pallas_call(
        kern,
        out_shape=jax.ShapeDtypeStruct((N, CPAD), jnp.float32),
        # Single invocation, no grid: all operands (a few hundred KiB) live in VMEM.
    )(patches, shift, pool, params["patch_w"], patch_aff, blk_slab, pww_slab, fwb)
    return out[:, :N_CLASS]


# ----------------------------- main -----------------------------------------
if __name__ == "__main__":
    key = jax.random.PRNGKey(0)
    k_x, k_p = jax.random.split(key)
    x = jax.random.normal(k_x, (BATCH, IN_CHANS, SPATIAL, SPATIAL), dtype=jnp.float32)
    params = init_params(k_p)

    out = image_model_forward(params, x)
    out = jax.block_until_ready(out)
    assert out.shape == (BATCH, N_CLASS), out.shape
    print("KERNEL_OK")
</pallas_src>

<mosaic_0001>
module attributes {stable_mosaic.version = 11 : i64} {
  func.func @_fused_kernel(%arg0: memref<32x48xf32, #tpu.memory_space<vmem>>, %arg1: memref<288x32xf32, #tpu.memory_space<vmem>>, %arg2: memref<2x32xf32, #tpu.memory_space<vmem>>, %arg3: memref<48x32xf32, #tpu.memory_space<vmem>>, %arg4: memref<3x32xf32, #tpu.memory_space<vmem>>, %arg5: memref<2x16x32xf32, #tpu.memory_space<vmem>>, %arg6: memref<2x32x32xf32, #tpu.memory_space<vmem>>, %arg7: memref<33x128xf32, #tpu.memory_space<vmem>>, %arg8: memref<2x128xf32, #tpu.memory_space<vmem>>) attributes {dimension_semantics = [], scalar_prefetch = 0 : i64, scratch_operands = 0 : i64, tpu.core_type = #tpu.core_type<tc>} {
    %c0 = arith.constant 0 : index
    %c0_0 = arith.constant 0 : index
    %0 = vector.load %arg4[%c0, %c0_0] : memref<3x32xf32, #tpu.memory_space<vmem>>, vector<3x32xf32>
    %c0_1 = arith.constant 0 : index
    %c0_2 = arith.constant 0 : index
    %1 = vector.load %arg0[%c0_1, %c0_2] : memref<32x48xf32, #tpu.memory_space<vmem>>, vector<32x48xf32>
    %c0_3 = arith.constant 0 : index
    %c0_4 = arith.constant 0 : index
    %2 = vector.load %arg3[%c0_3, %c0_4] : memref<48x32xf32, #tpu.memory_space<vmem>>, vector<48x32xf32>
    %3 = arith.truncf %1 : vector<32x48xf32> to vector<32x48xbf16>
    %4 = arith.truncf %2 : vector<48x32xf32> to vector<48x32xbf16>
    %cst = arith.constant dense<0.000000e+00> : vector<32x32xf32>
    %5 = tpu.matmul %3, %4, %cst {dimension_numbers = #tpu.dot_dimension_numbers<[1], [0], [0], [1], [0, 0, 1, 1], [], []>} : vector<32x48xbf16>, vector<48x32xbf16>, vector<32x32xf32> -> vector<32x32xf32>
    %6 = vector.extract_strided_slice %0 {offsets = [0, 0], sizes = [1, 32], strides = [1, 1]} : vector<3x32xf32> to vector<1x32xf32>
    %7 = vector.broadcast %6 : vector<1x32xf32> to vector<32x32xf32>
    %8 = arith.addf %5, %7 : vector<32x32xf32>
    %9 = arith.mulf %8, %8 : vector<32x32xf32>
    %10 = arith.mulf %8, %9 : vector<32x32xf32>
    %cst_5 = arith.constant 4.471500e-02 : f32
    %11 = vector.broadcast %cst_5 : f32 to vector<32x32xf32>
    %12 = arith.mulf %11, %10 : vector<32x32xf32>
    %13 = arith.addf %8, %12 : vector<32x32xf32>
    %cst_6 = arith.constant 0.797884583 : f32
    %14 = vector.broadcast %cst_6 : f32 to vector<32x32xf32>
    %15 = arith.mulf %14, %13 : vector<32x32xf32>
    %16 = math.tanh %15 : vector<32x32xf32>
    %cst_7 = arith.constant 1.000000e+00 : f32
    %17 = vector.broadcast %cst_7 : f32 to vector<32x32xf32>
    %18 = arith.addf %17, %16 : vector<32x32xf32>
    %cst_8 = arith.constant 5.000000e-01 : f32
    %19 = vector.broadcast %cst_8 : f32 to vector<32x32xf32>
    %20 = arith.mulf %19, %18 : vector<32x32xf32>
    %21 = arith.mulf %8, %20 : vector<32x32xf32>
    %22 = vector.extract_strided_slice %0 {offsets = [1, 0], sizes = [1, 32], strides = [1, 1]} : vector<3x32xf32> to vector<1x32xf32>
    %23 = vector.broadcast %22 : vector<1x32xf32> to vector<32x32xf32>
    %24 = arith.mulf %21, %23 : vector<32x32xf32>
    %25 = vector.extract_strided_slice %0 {offsets = [2, 0], sizes = [1, 32], strides = [1, 1]} : vector<3x32xf32> to vector<1x32xf32>
    %26 = vector.broadcast %25 : vector<1x32xf32> to vector<32x32xf32>
    %27 = arith.addf %24, %26 : vector<32x32xf32>
    %c0_9 = arith.constant 0 : index
    %c0_10 = arith.constant 0 : index
    %28 = vector.load %arg1[%c0_9, %c0_10] : memref<288x32xf32, #tpu.memory_space<vmem>>, vector<288x32xf32>
    %29 = arith.truncf %28 : vector<288x32xf32> to vector<288x32xbf16>
    %c0_11 = arith.constant 0 : index
    %c0_12 = arith.constant 0 : index
    %c0_13 = arith.constant 0 : index
    %30 = vector.load %arg5[%c0_11, %c0_12, %c0_13] : memref<2x16x32xf32, #tpu.memory_space<vmem>>, vector<1x16x32xf32>
    %31 = vector.shape_cast %30 : vector<1x16x32xf32> to vector<16x32xf32>
    %32 = vector.extract_strided_slice %31 {offsets = [0, 0], sizes = [9, 32], strides = [1, 1]} : vector<16x32xf32> to vector<9x32xf32>
    %33 = vector.extract_strided_slice %31 {offsets = [9, 0], sizes = [1, 32], strides = [1, 1]} : vector<16x32xf32> to vector<1x32xf32>
    %34 = vector.extract_strided_slice %31 {offsets = [10, 0], sizes = [1, 32], strides = [1, 1]} : vector<16x32xf32> to vector<1x32xf32>
    %35 = vector.extract_strided_slice %31 {offsets = [11, 0], sizes = [1, 32], strides = [1, 1]} : vector<16x32xf32> to vector<1x32xf32>
    %36 = vector.extract_strided_slice %31 {offsets = [12, 0], sizes = [1, 32], strides = [1, 1]} : vector<16x32xf32> to vector<1x32xf32>
    %37 = vector.extract_strided_slice %31 {offsets = [13, 0], sizes = [1, 32], strides = [1, 1]} : vector<16x32xf32> to vector<1x32xf32>
    %38 = vector.extract_strided_slice %31 {offsets = [14, 0], sizes = [1, 32], strides = [1, 1]} : vector<16x32xf32> to vector<1x32xf32>
    %39 = arith.truncf %27 : vector<32x32xf32> to vector<32x32xbf16>
    %cst_14 = arith.constant dense<0.000000e+00> : vector<288x32xf32>
    %40 = tpu.matmul %29, %39, %cst_14 {dimension_numbers = #tpu.dot_dimension_numbers<[1], [0], [0], [1], [0, 0, 1, 1], [], []>} : vector<288x32xbf16>, vector<32x32xbf16>, vector<288x32xf32> -> vector<288x32xf32>
    %41 = vector.extract_strided_slice %40 {offsets = [0, 0], sizes = [32, 32], strides = [1, 1]} : vector<288x32xf32> to vector<32x32xf32>
    %42 = vector.extract_strided_slice %32 {offsets = [0, 0], sizes = [1, 32], strides = [1, 1]} : vector<9x32xf32> to vector<1x32xf32>
    %43 = vector.broadcast %42 : vector<1x32xf32> to vector<32x32xf32>
    %44 = arith.mulf %41, %43 : vector<32x32xf32>
    %45 = vector.extract_strided_slice %40 {offsets = [32, 0], sizes = [32, 32], strides = [1, 1]} : vector<288x32xf32> to vector<32x32xf32>
    %46 = vector.extract_strided_slice %32 {offsets = [1, 0], sizes = [1, 32], strides = [1, 1]} : vector<9x32xf32> to vector<1x32xf32>
    %47 = vector.broadcast %46 : vector<1x32xf32> to vector<32x32xf32>
    %48 = arith.mulf %45, %47 : vector<32x32xf32>
    %49 = arith.addf %44, %48 : vector<32x32xf32>
    %50 = vector.extract_strided_slice %40 {offsets = [64, 0], sizes = [32, 32], strides = [1, 1]} : vector<288x32xf32> to vector<32x32xf32>
    %51 = vector.extract_strided_slice %32 {offsets = [2, 0], sizes = [1, 32], strides = [1, 1]} : vector<9x32xf32> to vector<1x32xf32>
    %52 = vector.broadcast %51 : vector<1x32xf32> to vector<32x32xf32>
    %53 = arith.mulf %50, %52 : vector<32x32xf32>
    %54 = arith.addf %49, %53 : vector<32x32xf32>
    %55 = vector.extract_strided_slice %40 {offsets = [96, 0], sizes = [32, 32], strides = [1, 1]} : vector<288x32xf32> to vector<32x32xf32>
    %56 = vector.extract_strided_slice %32 {offsets = [3, 0], sizes = [1, 32], strides = [1, 1]} : vector<9x32xf32> to vector<1x32xf32>
    %57 = vector.broadcast %56 : vector<1x32xf32> to vector<32x32xf32>
    %58 = arith.mulf %55, %57 : vector<32x32xf32>
    %59 = arith.addf %54, %58 : vector<32x32xf32>
    %60 = vector.extract_strided_slice %40 {offsets = [128, 0], sizes = [32, 32], strides = [1, 1]} : vector<288x32xf32> to vector<32x32xf32>
    %61 = vector.extract_strided_slice %32 {offsets = [4, 0], sizes = [1, 32], strides = [1, 1]} : vector<9x32xf32> to vector<1x32xf32>
    %62 = vector.broadcast %61 : vector<1x32xf32> to vector<32x32xf32>
    %63 = arith.mulf %60, %62 : vector<32x32xf32>
    %64 = arith.addf %59, %63 : vector<32x32xf32>
    %65 = vector.extract_strided_slice %40 {offsets = [160, 0], sizes = [32, 32], strides = [1, 1]} : vector<288x32xf32> to vector<32x32xf32>
    %66 = vector.extract_strided_slice %32 {offsets = [5, 0], sizes = [1, 32], strides = [1, 1]} : vector<9x32xf32> to vector<1x32xf32>
    %67 = vector.broadcast %66 : vector<1x32xf32> to vector<32x32xf32>
    %68 = arith.mulf %65, %67 : vector<32x32xf32>
    %69 = arith.addf %64, %68 : vector<32x32xf32>
    %70 = vector.extract_strided_slice %40 {offsets = [192, 0], sizes = [32, 32], strides = [1, 1]} : vector<288x32xf32> to vector<32x32xf32>
    %71 = vector.extract_strided_slice %32 {offsets = [6, 0], sizes = [1, 32], strides = [1, 1]} : vector<9x32xf32> to vector<1x32xf32>
    %72 = vector.broadcast %71 : vector<1x32xf32> to vector<32x32xf32>
    %73 = arith.mulf %70, %72 : vector<32x32xf32>
    %74 = arith.addf %69, %73 : vector<32x32xf32>
    %75 = vector.extract_strided_slice %40 {offsets = [224, 0], sizes = [32, 32], strides = [1, 1]} : vector<288x32xf32> to vector<32x32xf32>
    %76 = vector.extract_strided_slice %32 {offsets = [7, 0], sizes = [1, 32], strides = [1, 1]} : vector<9x32xf32> to vector<1x32xf32>
    %77 = vector.broadcast %76 : vector<1x32xf32> to vector<32x32xf32>
    %78 = arith.mulf %75, %77 : vector<32x32xf32>
    %79 = arith.addf %74, %78 : vector<32x32xf32>
    %80 = vector.extract_strided_slice %40 {offsets = [256, 0], sizes = [32, 32], strides = [1, 1]} : vector<288x32xf32> to vector<32x32xf32>
    %81 = vector.extract_strided_slice %32 {offsets = [8, 0], sizes = [1, 32], strides = [1, 1]} : vector<9x32xf32> to vector<1x32xf32>
    %82 = vector.broadcast %81 : vector<1x32xf32> to vector<32x32xf32>
    %83 = arith.mulf %80, %82 : vector<32x32xf32>
    %84 = arith.addf %79, %83 : vector<32x32xf32>
    %85 = vector.broadcast %33 : vector<1x32xf32> to vector<32x32xf32>
    %86 = arith.addf %84, %85 : vector<32x32xf32>
    %87 = arith.mulf %86, %86 : vector<32x32xf32>
    %88 = arith.mulf %86, %87 : vector<32x32xf32>
    %cst_15 = arith.constant 4.471500e-02 : f32
    %89 = vector.broadcast %cst_15 : f32 to vector<32x32xf32>
    %90 = arith.mulf %89, %88 : vector<32x32xf32>
    %91 = arith.addf %86, %90 : vector<32x32xf32>
    %cst_16 = arith.constant 0.797884583 : f32
    %92 = vector.broadcast %cst_16 : f32 to vector<32x32xf32>
    %93 = arith.mulf %92, %91 : vector<32x32xf32>
    %94 = math.tanh %93 : vector<32x32xf32>
    %cst_17 = arith.constant 1.000000e+00 : f32
    %95 = vector.broadcast %cst_17 : f32 to vector<32x32xf32>
    %96 = arith.addf %95, %94 : vector<32x32xf32>
    %cst_18 = arith.constant 5.000000e-01 : f32
    %97 = vector.broadcast %cst_18 : f32 to vector<32x32xf32>
    %98 = arith.mulf %97, %96 : vector<32x32xf32>
    %99 = arith.mulf %86, %98 : vector<32x32xf32>
    %100 = vector.broadcast %34 : vector<1x32xf32> to vector<32x32xf32>
    %101 = arith.mulf %99, %100 : vector<32x32xf32>
    %102 = vector.broadcast %35 : vector<1x32xf32> to vector<32x32xf32>
    %103 = arith.addf %101, %102 : vector<32x32xf32>
    %104 = arith.addf %103, %27 : vector<32x32xf32>
    %c0_19 = arith.constant 0 : index
    %c0_20 = arith.constant 0 : index
    %c0_21 = arith.constant 0 : index
    %105 = vector.load %arg6[%c0_19, %c0_20, %c0_21] : memref<2x32x32xf32, #tpu.memory_space<vmem>>, vector<1x32x32xf32>
    %106 = vector.shape_cast %105 : vector<1x32x32xf32> to vector<32x32xf32>
    %107 = arith.truncf %104 : vector<32x32xf32> to vector<32x32xbf16>
    %108 = arith.truncf %106 : vector<32x32xf32> to vector<32x32xbf16>
    %cst_22 = arith.constant dense<0.000000e+00> : vector<32x32xf32>
    %109 = tpu.matmul %107, %108, %cst_22 {dimension_numbers = #tpu.dot_dimension_numbers<[1], [0], [0], [1], [0, 0, 1, 1], [], []>} : vector<32x32xbf16>, vector<32x32xbf16>, vector<32x32xf32> -> vector<32x32xf32>
    %110 = vector.broadcast %36 : vector<1x32xf32> to vector<32x32xf32>
    %111 = arith.addf %109, %110 : vector<32x32xf32>
    %112 = arith.mulf %111, %111 : vector<32x32xf32>
    %113 = arith.mulf %111, %112 : vector<32x32xf32>
    %cst_23 = arith.constant 4.471500e-02 : f32
    %114 = vector.broadcast %cst_23 : f32 to vector<32x32xf32>
    %115 = arith.mulf %114, %113 : vector<32x32xf32>
    %116 = arith.addf %111, %115 : vector<32x32xf32>
    %cst_24 = arith.constant 0.797884583 : f32
    %117 = vector.broadcast %cst_24 : f32 to vector<32x32xf32>
    %118 = arith.mulf %117, %116 : vector<32x32xf32>
    %119 = math.tanh %118 : vector<32x32xf32>
    %cst_25 = arith.constant 1.000000e+00 : f32
    %120 = vector.broadcast %cst_25 : f32 to vector<32x32xf32>
    %121 = arith.addf %120, %119 : vector<32x32xf32>
    %cst_26 = arith.constant 5.000000e-01 : f32
    %122 = vector.broadcast %cst_26 : f32 to vector<32x32xf32>
    %123 = arith.mulf %122, %121 : vector<32x32xf32>
    %124 = arith.mulf %111, %123 : vector<32x32xf32>
    %125 = vector.broadcast %37 : vector<1x32xf32> to vector<32x32xf32>
    %126 = arith.mulf %124, %125 : vector<32x32xf32>
    %127 = vector.broadcast %38 : vector<1x32xf32> to vector<32x32xf32>
    %128 = arith.addf %126, %127 : vector<32x32xf32>
    %c1 = arith.constant 1 : index
    %c0_27 = arith.constant 0 : index
    %c0_28 = arith.constant 0 : index
    %129 = vector.load %arg5[%c1, %c0_27, %c0_28] : memref<2x16x32xf32, #tpu.memory_space<vmem>>, vector<1x16x32xf32>
    %130 = vector.shape_cast %129 : vector<1x16x32xf32> to vector<16x32xf32>
    %131 = vector.extract_strided_slice %130 {offsets = [0, 0], sizes = [9, 32], strides = [1, 1]} : vector<16x32xf32> to vector<9x32xf32>
    %132 = vector.extract_strided_slice %130 {offsets = [9, 0], sizes = [1, 32], strides = [1, 1]} : vector<16x32xf32> to vector<1x32xf32>
    %133 = vector.extract_strided_slice %130 {offsets = [10, 0], sizes = [1, 32], strides = [1, 1]} : vector<16x32xf32> to vector<1x32xf32>
    %134 = vector.extract_strided_slice %130 {offsets = [11, 0], sizes = [1, 32], strides = [1, 1]} : vector<16x32xf32> to vector<1x32xf32>
    %135 = vector.extract_strided_slice %130 {offsets = [12, 0], sizes = [1, 32], strides = [1, 1]} : vector<16x32xf32> to vector<1x32xf32>
    %136 = vector.extract_strided_slice %130 {offsets = [13, 0], sizes = [1, 32], strides = [1, 1]} : vector<16x32xf32> to vector<1x32xf32>
    %137 = vector.extract_strided_slice %130 {offsets = [14, 0], sizes = [1, 32], strides = [1, 1]} : vector<16x32xf32> to vector<1x32xf32>
    %138 = arith.truncf %128 : vector<32x32xf32> to vector<32x32xbf16>
    %cst_29 = arith.constant dense<0.000000e+00> : vector<288x32xf32>
    %139 = tpu.matmul %29, %138, %cst_29 {dimension_numbers = #tpu.dot_dimension_numbers<[1], [0], [0], [1], [0, 0, 1, 1], [], []>} : vector<288x32xbf16>, vector<32x32xbf16>, vector<288x32xf32> -> vector<288x32xf32>
    %140 = vector.extract_strided_slice %139 {offsets = [0, 0], sizes = [32, 32], strides = [1, 1]} : vector<288x32xf32> to vector<32x32xf32>
    %141 = vector.extract_strided_slice %131 {offsets = [0, 0], sizes = [1, 32], strides = [1, 1]} : vector<9x32xf32> to vector<1x32xf32>
    %142 = vector.broadcast %141 : vector<1x32xf32> to vector<32x32xf32>
    %143 = arith.mulf %140, %142 : vector<32x32xf32>
    %144 = vector.extract_strided_slice %139 {offsets = [32, 0], sizes = [32, 32], strides = [1, 1]} : vector<288x32xf32> to vector<32x32xf32>
    %145 = vector.extract_strided_slice %131 {offsets = [1, 0], sizes = [1, 32], strides = [1, 1]} : vector<9x32xf32> to vector<1x32xf32>
    %146 = vector.broadcast %145 : vector<1x32xf32> to vector<32x32xf32>
    %147 = arith.mulf %144, %146 : vector<32x32xf32>
    %148 = arith.addf %143, %147 : vector<32x32xf32>
    %149 = vector.extract_strided_slice %139 {offsets = [64, 0], sizes = [32, 32], strides = [1, 1]} : vector<288x32xf32> to vector<32x32xf32>
    %150 = vector.extract_strided_slice %131 {offsets = [2, 0], sizes = [1, 32], strides = [1, 1]} : vector<9x32xf32> to vector<1x32xf32>
    %151 = vector.broadcast %150 : vector<1x32xf32> to vector<32x32xf32>
    %152 = arith.mulf %149, %151 : vector<32x32xf32>
    %153 = arith.addf %148, %152 : vector<32x32xf32>
    %154 = vector.extract_strided_slice %139 {offsets = [96, 0], sizes = [32, 32], strides = [1, 1]} : vector<288x32xf32> to vector<32x32xf32>
    %155 = vector.extract_strided_slice %131 {offsets = [3, 0], sizes = [1, 32], strides = [1, 1]} : vector<9x32xf32> to vector<1x32xf32>
    %156 = vector.broadcast %155 : vector<1x32xf32> to vector<32x32xf32>
    %157 = arith.mulf %154, %156 : vector<32x32xf32>
    %158 = arith.addf %153, %157 : vector<32x32xf32>
    %159 = vector.extract_strided_slice %139 {offsets = [128, 0], sizes = [32, 32], strides = [1, 1]} : vector<288x32xf32> to vector<32x32xf32>
    %160 = vector.extract_strided_slice %131 {offsets = [4, 0], sizes = [1, 32], strides = [1, 1]} : vector<9x32xf32> to vector<1x32xf32>
    %161 = vector.broadcast %160 : vector<1x32xf32> to vector<32x32xf32>
    %162 = arith.mulf %159, %161 : vector<32x32xf32>
    %163 = arith.addf %158, %162 : vector<32x32xf32>
    %164 = vector.extract_strided_slice %139 {offsets = [160, 0], sizes = [32, 32], strides = [1, 1]} : vector<288x32xf32> to vector<32x32xf32>
    %165 = vector.extract_strided_slice %131 {offsets = [5, 0], sizes = [1, 32], strides = [1, 1]} : vector<9x32xf32> to vector<1x32xf32>
    %166 = vector.broadcast %165 : vector<1x32xf32> to vector<32x32xf32>
    %167 = arith.mulf %164, %166 : vector<32x32xf32>
    %168 = arith.addf %163, %167 : vector<32x32xf32>
    %169 = vector.extract_strided_slice %139 {offsets = [192, 0], sizes = [32, 32], strides = [1, 1]} : vector<288x32xf32> to vector<32x32xf32>
    %170 = vector.extract_strided_slice %131 {offsets = [6, 0], sizes = [1, 32], strides = [1, 1]} : vector<9x32xf32> to vector<1x32xf32>
    %171 = vector.broadcast %170 : vector<1x32xf32> to vector<32x32xf32>
    %172 = arith.mulf %169, %171 : vector<32x32xf32>
    %173 = arith.addf %168, %172 : vector<32x32xf32>
    %174 = vector.extract_strided_slice %139 {offsets = [224, 0], sizes = [32, 32], strides = [1, 1]} : vector<288x32xf32> to vector<32x32xf32>
    %175 = vector.extract_strided_slice %131 {offsets = [7, 0], sizes = [1, 32], strides = [1, 1]} : vector<9x32xf32> to vector<1x32xf32>
    %176 = vector.broadcast %175 : vector<1x32xf32> to vector<32x32xf32>
    %177 = arith.mulf %174, %176 : vector<32x32xf32>
    %178 = arith.addf %173, %177 : vector<32x32xf32>
    %179 = vector.extract_strided_slice %139 {offsets = [256, 0], sizes = [32, 32], strides = [1, 1]} : vector<288x32xf32> to vector<32x32xf32>
    %180 = vector.extract_strided_slice %131 {offsets = [8, 0], sizes = [1, 32], strides = [1, 1]} : vector<9x32xf32> to vector<1x32xf32>
    %181 = vector.broadcast %180 : vector<1x32xf32> to vector<32x32xf32>
    %182 = arith.mulf %179, %181 : vector<32x32xf32>
    %183 = arith.addf %178, %182 : vector<32x32xf32>
    %184 = vector.broadcast %132 : vector<1x32xf32> to vector<32x32xf32>
    %185 = arith.addf %183, %184 : vector<32x32xf32>
    %186 = arith.mulf %185, %185 : vector<32x32xf32>
    %187 = arith.mulf %185, %186 : vector<32x32xf32>
    %cst_30 = arith.constant 4.471500e-02 : f32
    %188 = vector.broadcast %cst_30 : f32 to vector<32x32xf32>
    %189 = arith.mulf %188, %187 : vector<32x32xf32>
    %190 = arith.addf %185, %189 : vector<32x32xf32>
    %cst_31 = arith.constant 0.797884583 : f32
    %191 = vector.broadcast %cst_31 : f32 to vector<32x32xf32>
    %192 = arith.mulf %191, %190 : vector<32x32xf32>
    %193 = math.tanh %192 : vector<32x32xf32>
    %cst_32 = arith.constant 1.000000e+00 : f32
    %194 = vector.broadcast %cst_32 : f32 to vector<32x32xf32>
    %195 = arith.addf %194, %193 : vector<32x32xf32>
    %cst_33 = arith.constant 5.000000e-01 : f32
    %196 = vector.broadcast %cst_33 : f32 to vector<32x32xf32>
    %197 = arith.mulf %196, %195 : vector<32x32xf32>
    %198 = arith.mulf %185, %197 : vector<32x32xf32>
    %199 = vector.broadcast %133 : vector<1x32xf32> to vector<32x32xf32>
    %200 = arith.mulf %198, %199 : vector<32x32xf32>
    %201 = vector.broadcast %134 : vector<1x32xf32> to vector<32x32xf32>
    %202 = arith.addf %200, %201 : vector<32x32xf32>
    %203 = arith.addf %202, %128 : vector<32x32xf32>
    %c1_34 = arith.constant 1 : index
    %c0_35 = arith.constant 0 : index
    %c0_36 = arith.constant 0 : index
    %204 = vector.load %arg6[%c1_34, %c0_35, %c0_36] : memref<2x32x32xf32, #tpu.memory_space<vmem>>, vector<1x32x32xf32>
    %205 = vector.shape_cast %204 : vector<1x32x32xf32> to vector<32x32xf32>
    %206 = arith.truncf %203 : vector<32x32xf32> to vector<32x32xbf16>
    %207 = arith.truncf %205 : vector<32x32xf32> to vector<32x32xbf16>
    %cst_37 = arith.constant dense<0.000000e+00> : vector<32x32xf32>
    %208 = tpu.matmul %206, %207, %cst_37 {dimension_numbers = #tpu.dot_dimension_numbers<[1], [0], [0], [1], [0, 0, 1, 1], [], []>} : vector<32x32xbf16>, vector<32x32xbf16>, vector<32x32xf32> -> vector<32x32xf32>
    %209 = vector.broadcast %135 : vector<1x32xf32> to vector<32x32xf32>
    %210 = arith.addf %208, %209 : vector<32x32xf32>
    %211 = arith.mulf %210, %210 : vector<32x32xf32>
    %212 = arith.mulf %210, %211 : vector<32x32xf32>
    %cst_38 = arith.constant 4.471500e-02 : f32
    %213 = vector.broadcast %cst_38 : f32 to vector<32x32xf32>
    %214 = arith.mulf %213, %212 : vector<32x32xf32>
    %215 = arith.addf %210, %214 : vector<32x32xf32>
    %cst_39 = arith.constant 0.797884583 : f32
    %216 = vector.broadcast %cst_39 : f32 to vector<32x32xf32>
    %217 = arith.mulf %216, %215 : vector<32x32xf32>
    %218 = math.tanh %217 : vector<32x32xf32>
    %cst_40 = arith.constant 1.000000e+00 : f32
    %219 = vector.broadcast %cst_40 : f32 to vector<32x32xf32>
    %220 = arith.addf %219, %218 : vector<32x32xf32>
    %cst_41 = arith.constant 5.000000e-01 : f32
    %221 = vector.broadcast %cst_41 : f32 to vector<32x32xf32>
    %222 = arith.mulf %221, %220 : vector<32x32xf32>
    %223 = arith.mulf %210, %222 : vector<32x32xf32>
    %224 = vector.broadcast %136 : vector<1x32xf32> to vector<32x32xf32>
    %225 = arith.mulf %223, %224 : vector<32x32xf32>
    %226 = vector.broadcast %137 : vector<1x32xf32> to vector<32x32xf32>
    %227 = arith.addf %225, %226 : vector<32x32xf32>
    %c0_42 = arith.constant 0 : index
    %c0_43 = arith.constant 0 : index
    %228 = vector.load %arg2[%c0_42, %c0_43] : memref<2x32xf32, #tpu.memory_space<vmem>>, vector<2x32xf32>
    %229 = arith.truncf %228 : vector<2x32xf32> to vector<2x32xbf16>
    %230 = arith.truncf %227 : vector<32x32xf32> to vector<32x32xbf16>
    %cst_44 = arith.constant dense<0.000000e+00> : vector<2x32xf32>
    %231 = tpu.matmul %229, %230, %cst_44 {dimension_numbers = #tpu.dot_dimension_numbers<[1], [0], [0], [1], [0, 0, 1, 1], [], []>} : vector<2x32xbf16>, vector<32x32xbf16>, vector<2x32xf32> -> vector<2x32xf32>
    %c0_45 = arith.constant 0 : index
    %c0_46 = arith.constant 0 : index
    %232 = vector.load %arg7[%c0_45, %c0_46] : memref<33x128xf32, #tpu.memory_space<vmem>>, vector<33x128xf32>
    %233 = vector.extract_strided_slice %232 {offsets = [0, 0], sizes = [32, 128], strides = [1, 1]} : vector<33x128xf32> to vector<32x128xf32>
    %234 = arith.truncf %231 : vector<2x32xf32> to vector<2x32xbf16>
    %235 = arith.truncf %233 : vector<32x128xf32> to vector<32x128xbf16>
    %cst_47 = arith.constant dense<0.000000e+00> : vector<2x128xf32>
    %236 = tpu.matmul %234, %235, %cst_47 {dimension_numbers = #tpu.dot_dimension_numbers<[1], [0], [0], [1], [0, 0, 1, 1], [], []>} : vector<2x32xbf16>, vector<32x128xbf16>, vector<2x128xf32> -> vector<2x128xf32>
    %237 = vector.extract_strided_slice %232 {offsets = [32, 0], sizes = [1, 128], strides = [1, 1]} : vector<33x128xf32> to vector<1x128xf32>
    %238 = vector.broadcast %237 : vector<1x128xf32> to vector<2x128xf32>
    %239 = arith.addf %236, %238 : vector<2x128xf32>
    %c0_48 = arith.constant 0 : index
    %c0_49 = arith.constant 0 : index
    %240 = vector.load %arg8[%c0_48, %c0_49] : memref<2x128xf32, #tpu.memory_space<vmem>>, vector<2x128xf32>
    tpu.vector_store %arg8[%c0_48, %c0_49], %239 {strides = array<i32>} : memref<2x128xf32, #tpu.memory_space<vmem>>, vector<2x128xf32>,
    return
  }
}

</mosaic_0001>

<bundles_post_ra>
// kernel: tpu_custom_call.1
= control target key start
LH: loop header
LB: loop body
LE: loop exit
PB: predicated region body
PF: predicated region fallthrough
CT: control target
= control target key end

     0   :  { %s1521_s0 = inlined_call_operand.vmem [shape: f32[32,48], index: 0, kind: input, shape index: {}]   ;;  %s1522_s1 = inlined_call_operand.vmem [shape: f32[288,32], index: 1, kind: input, shape index: {}]   ;;  %s1523_s2 = inlined_call_operand.vmem [shape: f32[2,32], index: 2, kind: input, shape index: {}]   ;;  %s1524_s3 = inlined_call_operand.vmem [shape: f32[48,32], index: 3, kind: input, shape index: {}]   ;;  %s1525_s4 = inlined_call_operand.vmem [shape: f32[3,32], index: 4, kind: input, shape index: {}]   ;;  %s1526_s5 = inlined_call_operand.vmem [shape: f32[2,16,32], index: 5, kind: input, shape index: {}]   ;;  %s1527_s6 = inlined_call_operand.vmem [shape: f32[2,32,32], index: 6, kind: input, shape index: {}]   ;;  %s1528_s7 = inlined_call_operand.vmem [shape: f32[33,128], index: 7, kind: input, shape index: {}]   ;;  %s1529_s8 = inlined_call_operand.hbm [shape: f32[2,128], index: 8, kind: output, shape index: {}]  }
   0x1   :  { %v40_v0 = vld [vmem:[%s1524_s3 + $0x20] sm:$0xff]  ;;  %v41_v1 = vld [vmem:[%s1524_s3 + $0x28] sm:$0xff]  ;;  %v38_v2 = vld [vmem:[%s1524_s3 + $0x10] sm:$0xff] }
   0x2   :  { %v46_v3 = vpack.c.bf16 %v41_v1, %v40_v0  ;;  %v39_v4 = vld [vmem:[%s1524_s3 + $0x18] sm:$0xff]  ;;  %v36_v6 = vld [vmem:[%s1524_s3] sm:$0xff]  ;;  %v37_v7 = vld [vmem:[%s1524_s3 + $0x8] sm:$0xff] }
   0x3   :  { %v45_v5 = vpack.c.bf16 %v39_v4, %v38_v2 }
   0x4   :  { %60 = vmatpush.bf16.msra.mxu0 %v46_v3 }
   0x5   :  { %13 = vsyncpa [#allocation3], 0  ;;  %v44_v8 = vpack.c.bf16 %v37_v7, %v36_v6  ;;  %v32_v9 = vld [vmem:[%s1521_s0] sm:$0xff]  ;;  %v33_v10 = vld [vmem:[%s1521_s0 + $0x8] sm:$0xff]  ;;  %vm48_vm0 = vcmask 392192   ;;  %vm178_vm1 = vcmask 261120  }
   0x6   :  { %v42_v11 = vpack.c.bf16 %v33_v10, %v32_v9  ;;  %v34_v12 = vld [vmem:[%s1521_s0 + $0x10] sm:$0xff]  ;;  %v35_v13 = vld [vmem:[%s1521_s0 + $0x18] sm:$0xff]  ;;  %v31_v15 = vld [vmem:[%s1525_s4] sm:$0x7]  ;;  %s1045_s27 = smov [#allocation2]   ;;  %s914_s9 = sshll.u32 %s1529_s8, 4  ;;  %s915_s9 = int_to_ptr.hbm [resolvable:$true] %s914_s9 }
   0x7   :  { %v43_v14 = vpack.c.bf16 %v35_v13, %v34_v12  ;;  %v47_v17 = vperm.slane %v31_v15, 0  ;;  %v110_v57 = vperm.slane %v31_v15, 1  ;;  %v115_v0 = vperm.slane %v31_v15, 2  ;;  %v121_v9 = vld [vmem:[%s1522_s1 + $0x8] sm:$0xff]  ;;  %v122_v12 = vld [vmem:[%s1522_s1 + $0x10] sm:$0xff]  ;;  %v123_v13 = vld [vmem:[%s1522_s1 + $0x18] sm:$0xff] }
   0x8   :  { %61 = vmatpush.bf16.msra.mxu0 %v45_v5  ;;  %v124_v15 = vld [vmem:[%s1522_s1 + $0x20] sm:$0xff]  ;;  %s912_s28 = sshll.u32 %s1045_s27, 4  ;;  %s913_s28 = int_to_ptr.vmem [resolvable:$true] %s912_s28 }
   0xc   :  { %62 = vmatpush.bf16.msra.mxu0 %v44_v8  ;;  %v120_v8 = vld [vmem:[%s1522_s1] sm:$0xff] }
   0xf   :  { %923 = vmatmul.msk.bf16.vlgmr.msra.gmra.mxu0 %vm48_vm0, %v42_v11  ;;  %v1142_v11 = vpack.c.bf16 %v121_v9, %v120_v8 }
  0x1f   :  { %924 = vmatmul.msk.bf16.gmra.mxu0 %vm48_vm0, %v43_v14  ;;  %v1152_v14 = vpack.c.bf16 %v123_v13, %v122_v12 }
  0x8c   :  { %v64_v16 = vpop.f32.mrf.mxu0 }
  0x8d   :  { %v65_v18 = vadd.f32 %v64_v16, %v47_v17  ;;  %v125_v16 = vld [vmem:[%s1522_s1 + $0x28] sm:$0xff] }
  0x8f   :  { %v74_v21 = vmul.f32 %v65_v18, %v65_v18 }
  0x91   :  { %v78_v24 = vmul.f32 %v74_v21, %v65_v18  ;;  %v144_v21 = vld [vmem:[%s1522_s1 + $0xc0] sm:$0xff] }
  0x93   :  { %v82_v28 = vmul.f32 0.044715, %v78_v24  ;;  %v128_v24 = vld [vmem:[%s1522_s1 + $0x40] sm:$0xff] }
  0x94   :  { %v66_v19 = vpop.f32.mrf.mxu0 }
  0x95   :  { %v67_v20 = vadd.f32 %v66_v19, %v47_v17  ;;  %v86_v32 = vadd.f32 %v82_v28, %v65_v18  ;;  %v127_v19 = vld [vmem:[%s1522_s1 + $0x38] sm:$0xff] }
  0x96   :  { %v147_v28 = vld [vmem:[%s1522_s1 + $0xd8] sm:$0xff] }
  0x97   :  { %v75_v22 = vmul.f32 %v67_v20, %v67_v20  ;;  %v90_v38 = vmul.f32 0.7978846, %v86_v32 }
  0x99   :  { %v79_v23 = vmul.f32 %v75_v22, %v67_v20  ;;  %v145_v22 = vld [vmem:[%s1522_s1 + $0xc8] sm:$0xff] }
  0x9b   :  { %v83_v25 = vmul.f32 0.044715, %v79_v23  ;;  %v1182_v23 = vpack.c.bf16 %v145_v22, %v144_v21 }
  0x9c   :  { %v69_v26 = vpop.f32.mrf.mxu0 }
  0x9d   :  { %v70_v27 = vadd.f32 %v69_v26, %v47_v17  ;;  %v87_v30 = vadd.f32 %v83_v25, %v67_v20  ;;  %v129_v25 = vld [vmem:[%s1522_s1 + $0x48] sm:$0xff] }
  0x9e   :  { %v1192_v26 = vpack.c.bf16 %v129_v25, %v128_v24 }
  0x9f   :  { %v76_v29 = vmul.f32 %v70_v27, %v70_v27  ;;  %v91_v34 = vmul.f32 0.7978846, %v87_v30  ;;  %v130_v30 = vld [vmem:[%s1522_s1 + $0x50] sm:$0xff] }
  0xa1   :  { %v80_v31 = vmul.f32 %v76_v29, %v70_v27  ;;  %979 = vtanh.f32 %v91_v34  ;;  %v149_v34 = vld [vmem:[%s1522_s1 + $0xe8] sm:$0xff] }
  0xa3   :  { %v84_v33 = vmul.f32 0.044715, %v80_v31  ;;  %v131_v31 = vld [vmem:[%s1522_s1 + $0x58] sm:$0xff] }
  0xa4   :  { %v71_v35 = vpop.f32.mrf.mxu0  ;;  %v1212_v32 = vpack.c.bf16 %v131_v31, %v130_v30 }
  0xa5   :  { %v88_v36 = vadd.f32 %v84_v33, %v70_v27  ;;  %v72_v37 = vadd.f32 %v71_v35, %v47_v17  ;;  %v1162_v17 = vpack.c.bf16 %v125_v16, %v124_v15  ;;  %v148_v33 = vld [vmem:[%s1522_s1 + $0xe0] sm:$0xff] }
  0xa6   :  { %v1222_v35 = vpack.c.bf16 %v149_v34, %v148_v33 }
  0xa7   :  { %v92_v39 = vmul.f32 0.7978846, %v88_v36  ;;  %v77_v40 = vmul.f32 %v72_v37, %v72_v37  ;;  %v980_v44 = vpop.eup %979  ;;  %v132_v36 = vld [vmem:[%s1522_s1 + $0x60] sm:$0xff] }
  0xa8   :  { %v99_v49 = vadd.f32 1.0, %v980_v44 }
  0xa9   :  { %981 = vtanh.f32 %v92_v39  ;;  %v81_v41 = vmul.f32 %v77_v40, %v72_v37  ;;  %v150_v39 = vld [vmem:[%s1522_s1 + $0xf0] sm:$0xff]  ;;  %v151_v40 = vld [vmem:[%s1522_s1 + $0xf8] sm:$0xff] }
  0xaa   :  { %983 = vtanh.f32 %v90_v38  ;;  %v103_v52 = vmul.f32 0.5, %v99_v49  ;;  %v137_v49 = vld [vmem:[%s1522_s1 + $0x88] sm:$0xff] }
  0xab   :  { %v85_v42 = vmul.f32 0.044715, %v81_v41  ;;  %v1242_v41 = vpack.c.bf16 %v151_v40, %v150_v39 }
  0xac   :  { %v107_v59 = vmul.f32 %v103_v52, %v67_v20 }
  0xad   :  { %v89_v43 = vadd.f32 %v85_v42, %v72_v37  ;;  %v134_v42 = vld [vmem:[%s1522_s1 + $0x70] sm:$0xff] }
  0xae   :  { %v112_v1 = vmul.f32 %v110_v57, %v107_v59 }
  0xaf   :  { %v982_v45 = vpop.eup %981  ;;  %v93_v46 = vmul.f32 0.7978846, %v89_v43  ;;  %v135_v43 = vld [vmem:[%s1522_s1 + $0x78] sm:$0xff] }
  0xb0   :  { %v100_v47 = vadd.f32 1.0, %v982_v45  ;;  %v984_v48 = vpop.eup %983  ;;  %v1130_v6 = vadd.f32 %v115_v0, %v112_v1  ;;  %v1252_v44 = vpack.c.bf16 %v135_v43, %v134_v42  ;;  %v152_v45 = vld [vmem:[%s1522_s1 + $0x100] sm:$0xff] }
  0xb1   :  { %985 = vtanh.f32 %v93_v46  ;;  %v98_v51 = vadd.f32 1.0, %v984_v48  ;;  %v153_v46 = vld [vmem:[%s1522_s1 + $0x108] sm:$0xff]  ;;  %v136_v48 = vld [vmem:[%s1522_s1 + $0x80] sm:$0xff] }
  0xb2   :  { %v104_v50 = vmul.f32 0.5, %v100_v47  ;;  %v1262_v47 = vpack.c.bf16 %v153_v46, %v152_v45 }
  0xb3   :  { %v102_v56 = vmul.f32 0.5, %v98_v51 }
  0xb4   :  { %v108_v55 = vmul.f32 %v104_v50, %v70_v27  ;;  %v146_v27 = vld [vmem:[%s1522_s1 + $0xd0] sm:$0xff]  ;;  %v1272_v50 = vpack.c.bf16 %v137_v49, %v136_v48 }
  0xb5   :  { %v106_v62 = vmul.f32 %v102_v56, %v65_v18  ;;  %v126_v18 = vld [vmem:[%s1522_s1 + $0x30] sm:$0xff]  ;;  %v1202_v29 = vpack.c.bf16 %v147_v28, %v146_v27 }
  0xb6   :  { %v113_v61 = vmul.f32 %v110_v57, %v108_v55  ;;  %v1172_v20 = vpack.c.bf16 %v127_v19, %v126_v18  ;;  %v138_v56 = vld [vmem:[%s1522_s1 + $0x90] sm:$0xff]  ;;  %v143_v19 = vld [vmem:[%s1522_s1 + $0xb8] sm:$0xff] }
  0xb7   :  { %v986_v53 = vpop.eup %985  ;;  %v111_v4 = vmul.f32 %v110_v57, %v106_v62  ;;  %v140_v62 = vld [vmem:[%s1522_s1 + $0xa0] sm:$0xff]  ;;  %v142_v18 = vld [vmem:[%s1522_s1 + $0xb0] sm:$0xff] }
  0xb8   :  { %v101_v54 = vadd.f32 1.0, %v986_v53  ;;  %v1124_v2 = vadd.f32 %v115_v0, %v113_v61  ;;  %v154_v53 = vld [vmem:[%s1522_s1 + $0x110] sm:$0xff]  ;;  %v1299_v61 = vld [vmem:[%s1526_s5] sm:$0xff]  ;;  %v1319_v21 = vpack.c.bf16 %v143_v19, %v142_v18 }
  0xb9   :  { %v1132_v7 = vadd.f32 %v115_v0, %v111_v4  ;;  %v337_v1 = vperm.slane %v1299_v61, 1  ;;  %v346_v34 = vperm.slane %v1299_v61, 2 }
  0xba   :  { %v105_v58 = vmul.f32 0.5, %v101_v54  ;;  %v155_v54 = vld [vmem:[%s1522_s1 + $0x118] sm:$0xff] }
  0xbb   :  { %v176_v10 = vpack.c.bf16 %v1130_v6, %v1132_v7  ;;  %v1282_v55 = vpack.c.bf16 %v155_v54, %v154_v53 }
  0xbc   :  { %v109_v60 = vmul.f32 %v105_v58, %v72_v37  ;;  %v133_v37 = vld [vmem:[%s1522_s1 + $0x68] sm:$0xff] }
  0xbd   :  { %v1232_v38 = vpack.c.bf16 %v133_v37, %v132_v36 }
  0xbe   :  { %v114_v63 = vmul.f32 %v110_v57, %v109_v60  ;;  %v139_v57 = vld [vmem:[%s1522_s1 + $0x98] sm:$0xff] }
  0xbf   :  { %v1292_v58 = vpack.c.bf16 %v139_v57, %v138_v56  ;;  %v1327_v56 = vperm.slane %v1299_v61, 3 }
  0xc0   :  { %v1126_v3 = vadd.f32 %v115_v0, %v114_v63  ;;  %v141_v63 = vld [vmem:[%s1522_s1 + $0xa8] sm:$0xff]  ;;  %v332_v0 = vperm.slane %v1299_v61, 0 }
  0xc1   :  { %v1309_v4 = vpack.c.bf16 %v141_v63, %v140_v62 }
  0xc2   :  { %v177_v5 = vpack.c.bf16 %v1126_v3, %v1124_v2 }
  0xc4   :  { %239 = vmatpush.bf16.msra.mxu1 %v177_v5  ;;  %973 = vmatpush.bf16.msra.mxu2 %v177_v5 }
  0xc8   :  { %240 = vmatpush.bf16.msra.mxu1 %v176_v10  ;;  %974 = vmatpush.bf16.msra.mxu2 %v176_v10 }
  0xcb   :  { %925 = vmatmul.msk.bf16.vlgmr.msra.gmra.mxu1 %vm178_vm1, %v1142_v11  ;;  %937 = vmatmul.msk.bf16.vlgmr.msra.gmra.mxu2 %vm178_vm1, %v1182_v23 }
  0xdb   :  { %926 = vmatmul.msk.bf16.gmra.mxu1 %vm178_vm1, %v1152_v14  ;;  %938 = vmatmul.msk.bf16.gmra.mxu2 %vm178_vm1, %v1202_v29 }
  0xeb   :  { %927 = vmatmul.msk.bf16.gmra.mxu1 %vm178_vm1, %v1162_v17  ;;  %939 = vmatmul.msk.bf16.gmra.mxu2 %vm178_vm1, %v1222_v35 }
  0xfb   :  { %928 = vmatmul.msk.bf16.gmra.mxu1 %vm178_vm1, %v1172_v20  ;;  %940 = vmatmul.msk.bf16.gmra.mxu2 %vm178_vm1, %v1242_v41 }
 0x10b   :  { %929 = vmatmul.msk.bf16.gmra.mxu1 %vm178_vm1, %v1192_v26  ;;  %941 = vmatmul.msk.bf16.gmra.mxu2 %vm178_vm1, %v1262_v47 }
 0x11b   :  { %930 = vmatmul.msk.bf16.gmra.mxu1 %vm178_vm1, %v1212_v32  ;;  %942 = vmatmul.msk.bf16.gmra.mxu2 %vm178_vm1, %v1282_v55 }
 0x12b   :  { %931 = vmatmul.msk.bf16.gmra.mxu1 %vm178_vm1, %v1232_v38 }
 0x13b   :  { %932 = vmatmul.msk.bf16.gmra.mxu1 %vm178_vm1, %v1252_v44 }
 0x148   :  { %v242_v51 = vpop.f32.mrf.mxu1 }
 0x149   :  { %v333_v8 = vmul.f32 %v332_v0, %v242_v51 }
 0x14b   :  { %933 = vmatmul.msk.bf16.gmra.mxu1 %vm178_vm1, %v1272_v50 }
 0x14e   :  { %v302_v45 = vpop.f32.mrf.mxu2 }
 0x150   :  { %v244_v52 = vpop.f32.mrf.mxu1 }
 0x151   :  { %v334_v13 = vmul.f32 %v332_v0, %v244_v52 }
 0x156   :  { %v304_v52 = vpop.f32.mrf.mxu2 }
 0x158   :  { %v247_v59 = vpop.f32.mrf.mxu1 }
 0x159   :  { %v335_v24 = vmul.f32 %v332_v0, %v247_v59 }
 0x15b   :  { %934 = vmatmul.msk.bf16.gmra.mxu1 %vm178_vm1, %v1292_v58 }
 0x160   :  { %v249_v60 = vpop.f32.mrf.mxu1 }
 0x161   :  { %v336_v30 = vmul.f32 %v332_v0, %v249_v60  ;;  %v1330_v60 = vpop.f32.mrf.mxu2 }
 0x168   :  { %v252_v5 = vpop.f32.mrf.mxu1 }
 0x169   :  { %v338_v9 = vmul.f32 %v337_v1, %v252_v5  ;;  %v1332_v0 = vpop.f32.mrf.mxu2 }
 0x16b   :  { %v342_v10 = vadd.f32 %v338_v9, %v333_v8  ;;  %935 = vmatmul.msk.bf16.gmra.mxu1 %vm178_vm1, %v1309_v4 }
 0x170   :  { %v254_v12 = vpop.f32.mrf.mxu1 }
 0x171   :  { %v339_v15 = vmul.f32 %v337_v1, %v254_v12  ;;  %v312_v9 = vpop.f32.mrf.mxu2 }
 0x173   :  { %v343_v16 = vadd.f32 %v339_v15, %v334_v13 }
 0x178   :  { %v257_v22 = vpop.f32.mrf.mxu1 }
 0x179   :  { %v340_v25 = vmul.f32 %v337_v1, %v257_v22  ;;  %v314_v13 = vpop.f32.mrf.mxu2 }
 0x17b   :  { %v344_v27 = vadd.f32 %v340_v25, %v335_v24  ;;  %936 = vmatmul.msk.bf16.gmra.mxu1 %vm178_vm1, %v1319_v21  ;;  %v364_v24 = vperm.slane %v1299_v61, 4 }
 0x180   :  { %v259_v28 = vpop.f32.mrf.mxu1 }
 0x181   :  { %v341_v31 = vmul.f32 %v337_v1, %v259_v28  ;;  %v1344_v28 = vld [vmem:[%s1526_s5 + $0x8] sm:$0xff] }
 0x183   :  { %v345_v33 = vadd.f32 %v341_v31, %v336_v30  ;;  %v1347_v31 = vperm.slane %v1299_v61, 6 }
 0x188   :  { %v262_v36 = vpop.f32.mrf.mxu1 }
 0x189   :  { %v347_v37 = vmul.f32 %v346_v34, %v262_v36 }
 0x18b   :  { %v351_v39 = vadd.f32 %v347_v37, %v342_v10  ;;  %v1353_v37 = vperm.slane %v1344_v28, 0 }
 0x190   :  { %v264_v40 = vpop.f32.mrf.mxu1 }
 0x191   :  { %v348_v42 = vmul.f32 %v346_v34, %v264_v40  ;;  %v383_v40 = vmul.f32 %v1347_v31, %v302_v45 }
 0x193   :  { %v352_v43 = vadd.f32 %v348_v42, %v343_v16  ;;  %v317_v16 = vpop.f32.mrf.mxu2 }
 0x198   :  { %v267_v46 = vpop.f32.mrf.mxu1 }
 0x199   :  { %v349_v48 = vmul.f32 %v346_v34, %v267_v46 }
 0x19b   :  { %v353_v49 = vadd.f32 %v349_v48, %v344_v27  ;;  %v1335_v19 = vpop.f32.mrf.mxu2  ;;  %v1339_v27 = vperm.slane %v1299_v61, 5 }
 0x1a0   :  { %v269_v51 = vpop.f32.mrf.mxu1 }
 0x1a1   :  { %v350_v53 = vmul.f32 %v346_v34, %v269_v51  ;;  %v1350_v34 = vperm.slane %v1299_v61, 7 }
 0x1a3   :  { %v1324_v54 = vadd.f32 %v350_v53, %v345_v33  ;;  %v322_v30 = vpop.f32.mrf.mxu2  ;;  %v392_v48 = vmul.f32 %v1350_v34, %v312_v9  ;;  %v467_v9 = vld [vmem:[%s1527_s6 + $0x18] sm:$0xff] }
 0x1a4   :  { %v401_v51 = vmul.f32 %v1353_v37, %v322_v30  ;;  %v384_v30 = vmul.f32 %v1347_v31, %v304_v52 }
 0x1a8   :  { %v272_v57 = vpop.f32.mrf.mxu1 }
 0x1a9   :  { %v356_v59 = vmul.f32 %v1327_v56, %v272_v57 }
 0x1ab   :  { %v360_v62 = vadd.f32 %v356_v59, %v351_v39  ;;  %v1361_v59 = vperm.slane %v1344_v28, 1 }
 0x1b0   :  { %v274_v63 = vpop.f32.mrf.mxu1 }
 0x1b1   :  { %v357_v42 = vmul.f32 %v1327_v56, %v274_v63  ;;  %v466_v63 = vld [vmem:[%s1527_s6 + $0x10] sm:$0xff] }
 0x1b3   :  { %v361_v57 = vadd.f32 %v357_v42, %v352_v43  ;;  %v464_v43 = vld [vmem:[%s1527_s6] sm:$0xff] }
 0x1b8   :  { %v277_v1 = vpop.f32.mrf.mxu1 }
 0x1b9   :  { %v358_v5 = vmul.f32 %v1327_v56, %v277_v1 }
 0x1bb   :  { %v362_v8 = vadd.f32 %v358_v5, %v353_v49 }
 0x1c0   :  { %v279_v10 = vpop.f32.mrf.mxu1 }
 0x1c8   :  { %v282_v12 = vpop.f32.mrf.mxu1 }
 0x1c9   :  { %v365_v25 = vmul.f32 %v364_v24, %v282_v12 }
 0x1cb   :  { %v369_v36 = vadd.f32 %v365_v25, %v360_v62  ;;  %v324_v62 = vpop.f32.mrf.mxu2  ;;  %v465_v25 = vld [vmem:[%s1527_s6 + $0x8] sm:$0xff] }
 0x1d0   :  { %v284_v15 = vpop.f32.mrf.mxu1 }
 0x1d1   :  { %v366_v49 = vmul.f32 %v364_v24, %v284_v15  ;;  %v471_v15 = vpack.c.bf16 %v467_v9, %v466_v63 }
 0x1d3   :  { %v370_v5 = vadd.f32 %v366_v49, %v361_v57  ;;  %485 = vmatpush.bf16.msrb.mxu2 %v471_v15 }
 0x1d8   :  { %v287_v18 = vpop.f32.mrf.mxu1 }
 0x1d9   :  { %v367_v42 = vmul.f32 %v364_v24, %v287_v18 }
 0x1e0   :  { %v289_v22 = vpop.f32.mrf.mxu1 }
 0x1e1   :  { %v368_v15 = vmul.f32 %v364_v24, %v289_v22 }
 0x1e8   :  { %v292_v33 = vpop.f32.mrf.mxu1 }
 0x1e9   :  { %v374_v39 = vmul.f32 %v1339_v27, %v292_v33 }
 0x1eb   :  { %v378_v46 = vadd.f32 %v374_v39, %v369_v36  ;;  %v470_v39 = vpack.c.bf16 %v465_v25, %v464_v43 }
 0x1ed   :  { %v387_v53 = vadd.f32 %v383_v40, %v378_v46  ;;  %v393_v40 = vmul.f32 %v1350_v34, %v314_v13  ;;  %486 = vmatpush.bf16.msrb.mxu2 %v470_v39  ;;  %v359_v13 = vmul.f32 %v1327_v56, %v279_v10 }
 0x1ef   :  { %v396_v61 = vadd.f32 %v392_v48, %v387_v53 }
 0x1f0   :  { %v294_v1 = vpop.f32.mrf.mxu1 }
 0x1f1   :  { %v405_v12 = vadd.f32 %v401_v51, %v396_v61  ;;  %v375_v45 = vmul.f32 %v1339_v27, %v294_v1  ;;  %v402_v51 = vmul.f32 %v1353_v37, %v324_v62  ;;  %v371_v61 = vadd.f32 %v367_v42, %v362_v8 }
 0x1f2   :  { %v394_v62 = vmul.f32 %v1350_v34, %v317_v16  ;;  %v386_v16 = vmul.f32 %v1347_v31, %v1332_v0 }
 0x1f3   :  { %v410_v33 = vadd.f32 %v1361_v59, %v405_v12  ;;  %v379_v36 = vadd.f32 %v375_v45, %v370_v5  ;;  %v385_v5 = vmul.f32 %v1347_v31, %v1330_v60  ;;  %v327_v12 = vpop.f32.mrf.mxu2 }
 0x1f4   :  { %v403_v43 = vmul.f32 %v1353_v37, %v327_v12 }
 0x1f5   :  { %v414_v46 = vmul.f32 %v410_v33, %v410_v33  ;;  %v388_v48 = vadd.f32 %v384_v30, %v379_v36  ;;  %v363_v36 = vadd.f32 %v359_v13, %v1324_v54  ;;  %v395_v54 = vmul.f32 %v1350_v34, %v1335_v19 }
 0x1f7   :  { %v418_v49 = vmul.f32 %v414_v46, %v410_v33  ;;  %v397_v53 = vadd.f32 %v393_v40, %v388_v48  ;;  %v372_v42 = vadd.f32 %v368_v15, %v363_v36 }
 0x1f8   :  { %v297_v57 = vpop.f32.mrf.mxu1 }
 0x1f9   :  { %v422_v1 = vmul.f32 0.044715, %v418_v49  ;;  %v406_v63 = vadd.f32 %v402_v51, %v397_v53  ;;  %v376_v52 = vmul.f32 %v1339_v27, %v297_v57 }
 0x1fb   :  { %v426_v18 = vadd.f32 %v422_v1, %v410_v33  ;;  %v411_v45 = vadd.f32 %v1361_v59, %v406_v63  ;;  %v380_v9 = vadd.f32 %v376_v52, %v371_v61  ;;  %v329_v49 = vpop.f32.mrf.mxu2 }
 0x1fd   :  { %v430_v8 = vmul.f32 0.7978846, %v426_v18  ;;  %v415_v25 = vmul.f32 %v411_v45, %v411_v45  ;;  %v389_v30 = vadd.f32 %v385_v5, %v380_v9  ;;  %v450_v9 = vperm.slane %v1344_v28, 2 }
 0x1ff   :  { %987 = vtanh.f32 %v430_v8  ;;  %v419_v39 = vmul.f32 %v415_v25, %v411_v45  ;;  %v398_v60 = vadd.f32 %v394_v62, %v389_v30 }
 0x200   :  { %v299_v40 = vpop.f32.mrf.mxu1 }
 0x201   :  { %v423_v56 = vmul.f32 0.044715, %v419_v39  ;;  %v407_v10 = vadd.f32 %v403_v43, %v398_v60  ;;  %v377_v46 = vmul.f32 %v1339_v27, %v299_v40  ;;  %v404_v27 = vmul.f32 %v1353_v37, %v329_v49 }
 0x202   :  { %v455_v37 = vperm.slane %v1344_v28, 3 }
 0x203   :  { %v427_v48 = vadd.f32 %v423_v56, %v411_v45  ;;  %v412_v22 = vadd.f32 %v1361_v59, %v407_v10  ;;  %v381_v24 = vadd.f32 %v377_v46, %v372_v42 }
 0x205   :  { %v988_v51 = vpop.eup %987  ;;  %v431_v53 = vmul.f32 0.7978846, %v427_v48  ;;  %v416_v57 = vmul.f32 %v412_v22, %v412_v22  ;;  %v390_v61 = vadd.f32 %v386_v16, %v381_v24 }
 0x206   :  { %v438_v1 = vadd.f32 1.0, %v988_v51 }
 0x207   :  { %989 = vtanh.f32 %v431_v53  ;;  %v420_v63 = vmul.f32 %v416_v57, %v412_v22  ;;  %v399_v52 = vadd.f32 %v395_v54, %v390_v61 }
 0x208   :  { %v442_v5 = vmul.f32 0.5, %v438_v1 }
 0x209   :  { %v424_v0 = vmul.f32 0.044715, %v420_v63  ;;  %v408_v31 = vadd.f32 %v404_v27, %v399_v52  ;;  %v472_v52 = vperm.slane %v1344_v28, 4 }
 0x20a   :  { %v446_v18 = vmul.f32 %v442_v5, %v410_v33 }
 0x20b   :  { %v413_v12 = vadd.f32 %v1361_v59, %v408_v31  ;;  %v428_v13 = vadd.f32 %v424_v0, %v412_v22 }
 0x20c   :  { %v451_v25 = vmul.f32 %v450_v9, %v446_v18 }
 0x20d   :  { %v990_v62 = vpop.eup %989  ;;  %v417_v19 = vmul.f32 %v413_v12, %v413_v12  ;;  %v432_v34 = vmul.f32 0.7978846, %v428_v13 }
 0x20e   :  { %v439_v43 = vadd.f32 1.0, %v990_v62  ;;  %v456_v40 = vadd.f32 %v455_v37, %v451_v25 }
 0x20f   :  { %v421_v15 = vmul.f32 %v417_v19, %v413_v12  ;;  %991 = vtanh.f32 %v432_v34 }
 0x210   :  { %v443_v8 = vmul.f32 0.5, %v439_v43  ;;  %v460_v10 = vadd.f32 %v456_v40, %v1132_v7 }
 0x211   :  { %v425_v30 = vmul.f32 0.044715, %v421_v15 }
 0x212   :  { %v447_v36 = vmul.f32 %v443_v8, %v411_v45 }
 0x213   :  { %v429_v39 = vadd.f32 %v425_v30, %v413_v12 }
 0x214   :  { %v452_v60 = vmul.f32 %v450_v9, %v447_v36 }
 0x215   :  { %v992_v59 = vpop.eup %991  ;;  %v433_v42 = vmul.f32 0.7978846, %v429_v39 }
 0x216   :  { %v457_v33 = vadd.f32 %v455_v37, %v452_v60  ;;  %v440_v56 = vadd.f32 1.0, %v992_v59 }
 0x217   :  { %993 = vtanh.f32 %v433_v42 }
 0x218   :  { %v461_v46 = vadd.f32 %v457_v33, %v1130_v6  ;;  %v444_v16 = vmul.f32 0.5, %v440_v56 }
 0x21a   :  { %v468_v48 = vpack.c.bf16 %v461_v46, %v460_v10  ;;  %v448_v24 = vmul.f32 %v444_v16, %v412_v22 }
 0x21c   :  { %943 = vmatmul.msk.bf16.vlgmr.msrb.gmra.mxu2 %vm178_vm1, %v468_v48  ;;  %v453_v54 = vmul.f32 %v450_v9, %v448_v24 }
 0x21d   :  { %v994_v49 = vpop.eup %993 }
 0x21e   :  { %v441_v51 = vadd.f32 1.0, %v994_v49  ;;  %v458_v61 = vadd.f32 %v455_v37, %v453_v54 }
 0x220   :  { %v445_v45 = vmul.f32 0.5, %v441_v51  ;;  %v462_v63 = vadd.f32 %v458_v61, %v1124_v2 }
 0x222   :  { %v449_v53 = vmul.f32 %v445_v45, %v413_v12 }
 0x224   :  { %v454_v57 = vmul.f32 %v450_v9, %v449_v53 }
 0x226   :  { %v459_v1 = vadd.f32 %v455_v37, %v454_v57 }
 0x228   :  { %v463_v27 = vadd.f32 %v459_v1, %v1126_v3 }
 0x22a   :  { %v469_v7 = vpack.c.bf16 %v463_v27, %v462_v63  ;;  %v534_v63 = vperm.slane %v1344_v28, 5 }
 0x22c   :  { %944 = vmatmul.msk.bf16.gmra.mxu2 %vm178_vm1, %v469_v7 }
 0x29f   :  { %v488_v6 = vpop.f32.mrf.mxu2 }
 0x2a0   :  { %v489_v5 = vadd.f32 %v488_v6, %v472_v52 }
 0x2a2   :  { %v498_v31 = vmul.f32 %v489_v5, %v489_v5 }
 0x2a4   :  { %v502_v12 = vmul.f32 %v498_v31, %v489_v5  ;;  %v539_v31 = vperm.slane %v1344_v28, 6 }
 0x2a6   :  { %v506_v34 = vmul.f32 0.044715, %v502_v12 }
 0x2a7   :  { %v490_v22 = vpop.f32.mrf.mxu2 }
 0x2a8   :  { %v491_v0 = vadd.f32 %v490_v22, %v472_v52  ;;  %v510_v15 = vadd.f32 %v506_v34, %v489_v5 }
 0x2aa   :  { %v499_v13 = vmul.f32 %v491_v0, %v491_v0  ;;  %v514_v39 = vmul.f32 0.7978846, %v510_v15 }
 0x2ac   :  { %v503_v18 = vmul.f32 %v499_v13, %v491_v0 }
 0x2ae   :  { %v507_v9 = vmul.f32 0.044715, %v503_v18 }
 0x2af   :  { %v493_v62 = vpop.f32.mrf.mxu2 }
 0x2b0   :  { %v494_v19 = vadd.f32 %v493_v62, %v472_v52  ;;  %v511_v43 = vadd.f32 %v507_v9, %v491_v0 }
 0x2b2   :  { %v500_v2 = vmul.f32 %v494_v19, %v494_v19  ;;  %v515_v25 = vmul.f32 0.7978846, %v511_v43 }
 0x2b4   :  { %v504_v3 = vmul.f32 %v500_v2, %v494_v19  ;;  %995 = vtanh.f32 %v515_v25 }
 0x2b6   :  { %v508_v8 = vmul.f32 0.044715, %v504_v3 }
 0x2b7   :  { %v495_v37 = vpop.f32.mrf.mxu2 }
 0x2b8   :  { %v512_v30 = vadd.f32 %v508_v8, %v494_v19  ;;  %v496_v36 = vadd.f32 %v495_v37, %v472_v52 }
 0x2ba   :  { %v516_v60 = vmul.f32 0.7978846, %v512_v30  ;;  %v501_v40 = vmul.f32 %v496_v36, %v496_v36  ;;  %v996_v56 = vpop.eup %995 }
 0x2bb   :  { %v523_v24 = vadd.f32 1.0, %v996_v56 }
 0x2bc   :  { %997 = vtanh.f32 %v516_v60  ;;  %v505_v59 = vmul.f32 %v501_v40, %v496_v36 }
 0x2bd   :  { %999 = vtanh.f32 %v514_v39  ;;  %v527_v45 = vmul.f32 0.5, %v523_v24 }
 0x2be   :  { %v509_v42 = vmul.f32 0.044715, %v505_v59 }
 0x2bf   :  { %v531_v27 = vmul.f32 %v527_v45, %v491_v0 }
 0x2c0   :  { %v513_v33 = vadd.f32 %v509_v42, %v496_v36 }
 0x2c1   :  { %v536_v13 = vmul.f32 %v534_v63, %v531_v27 }
 0x2c2   :  { %v998_v10 = vpop.eup %997  ;;  %v517_v46 = vmul.f32 0.7978846, %v513_v33 }
 0x2c3   :  { %v524_v16 = vadd.f32 1.0, %v998_v10  ;;  %v1000_v48 = vpop.eup %999 }
 0x2c4   :  { %1001 = vtanh.f32 %v517_v46  ;;  %v522_v51 = vadd.f32 1.0, %v1000_v48 }
 0x2c5   :  { %v528_v49 = vmul.f32 0.5, %v524_v16 }
 0x2c6   :  { %v526_v61 = vmul.f32 0.5, %v522_v51 }
 0x2c7   :  { %v532_v57 = vmul.f32 %v528_v49, %v494_v19  ;;  %v1413_v19 = vadd.f32 %v539_v31, %v536_v13 }
 0x2c8   :  { %v530_v52 = vmul.f32 %v526_v61, %v489_v5 }
 0x2c9   :  { %v537_v6 = vmul.f32 %v534_v63, %v532_v57 }
 0x2ca   :  { %v1002_v54 = vpop.eup %1001  ;;  %v535_v9 = vmul.f32 %v534_v63, %v530_v52 }
 0x2cb   :  { %v525_v53 = vadd.f32 1.0, %v1002_v54  ;;  %v1407_v18 = vadd.f32 %v539_v31, %v537_v6 }
 0x2cc   :  { %v1415_v0 = vadd.f32 %v539_v31, %v535_v9 }
 0x2cd   :  { %v529_v1 = vmul.f32 0.5, %v525_v53 }
 0x2ce   :  { %v547_v5 = vpack.c.bf16 %v1413_v19, %v1415_v0 }
 0x2cf   :  { %v533_v7 = vmul.f32 %v529_v1, %v496_v36 }
 0x2d1   :  { %v538_v22 = vmul.f32 %v534_v63, %v533_v7 }
 0x2d3   :  { %v1409_v12 = vadd.f32 %v539_v31, %v538_v22 }
 0x2d5   :  { %v548_v62 = vpack.c.bf16 %v1409_v12, %v1407_v18 }
 0x2d7   :  { %555 = vmatpush.bf16.msrb.mxu0 %v548_v62  ;;  %975 = vmatpush.bf16.msra.mxu3 %v548_v62 }
 0x2db   :  { %556 = vmatpush.bf16.msrb.mxu0 %v547_v5  ;;  %976 = vmatpush.bf16.msra.mxu3 %v547_v5 }
 0x2de   :  { %947 = vmatmul.msk.bf16.vlgmr.msrb.gmra.mxu0 %vm178_vm1, %v1142_v11  ;;  %953 = vmatmul.msk.bf16.vlgmr.msra.gmra.mxu3 %vm178_vm1, %v1232_v38 }
 0x2ee   :  { %948 = vmatmul.msk.bf16.gmra.mxu0 %vm178_vm1, %v1152_v14  ;;  %954 = vmatmul.msk.bf16.gmra.mxu3 %vm178_vm1, %v1252_v44 }
 0x2fe   :  { %949 = vmatmul.msk.bf16.gmra.mxu0 %vm178_vm1, %v1162_v17  ;;  %955 = vmatmul.msk.bf16.gmra.mxu3 %vm178_vm1, %v1272_v50 }
 0x30e   :  { %950 = vmatmul.msk.bf16.gmra.mxu0 %vm178_vm1, %v1172_v20  ;;  %956 = vmatmul.msk.bf16.gmra.mxu3 %vm178_vm1, %v1292_v58 }
 0x31e   :  { %951 = vmatmul.msk.bf16.gmra.mxu0 %vm178_vm1, %v1192_v26  ;;  %957 = vmatmul.msk.bf16.gmra.mxu3 %vm178_vm1, %v1309_v4 }
 0x32e   :  { %952 = vmatmul.msk.bf16.gmra.mxu0 %vm178_vm1, %v1212_v32  ;;  %958 = vmatmul.msk.bf16.gmra.mxu3 %vm178_vm1, %v1319_v21 }
 0x33e   :  { %959 = vmatmul.msk.bf16.gmra.mxu3 %vm178_vm1, %v1182_v23 }
 0x34e   :  { %960 = vmatmul.msk.bf16.gmra.mxu3 %vm178_vm1, %v1202_v29 }
 0x35b   :  { %v558_v11 = vpop.f32.mrf.mxu0 }
 0x35e   :  { %961 = vmatmul.msk.bf16.gmra.mxu3 %vm178_vm1, %v1222_v35  ;;  %v1458_v35 = vld [vmem:[%s1526_s5 + $0x10] sm:$0xff] }
 0x35f   :  { %v648_v21 = vperm.slane %v1458_v35, 0  ;;  %v653_v28 = vperm.slane %v1458_v35, 1  ;;  %v662_v43 = vperm.slane %v1458_v35, 2  ;;  %v671_v3 = vperm.slane %v1458_v35, 3 }
 0x360   :  { %v680_v25 = vperm.slane %v1458_v35, 4  ;;  %v689_v40 = vperm.slane %v1458_v35, 5 }
 0x361   :  { %v588_v14 = vpop.f32.mrf.mxu3  ;;  %v649_v2 = vmul.f32 %v648_v21, %v558_v11 }
 0x362   :  { %v672_v30 = vmul.f32 %v671_v3, %v588_v14 }
 0x363   :  { %v560_v17 = vpop.f32.mrf.mxu0 }
 0x364   :  { %v650_v36 = vmul.f32 %v648_v21, %v560_v17 }
 0x369   :  { %v590_v20 = vpop.f32.mrf.mxu3 }
 0x36a   :  { %v673_v49 = vmul.f32 %v671_v3, %v590_v20 }
 0x36b   :  { %v563_v26 = vpop.f32.mrf.mxu0 }
 0x36c   :  { %v651_v51 = vmul.f32 %v648_v21, %v563_v26 }
 0x36e   :  { %962 = vmatmul.msk.bf16.gmra.mxu3 %vm178_vm1, %v1242_v41 }
 0x371   :  { %v593_v32 = vpop.f32.mrf.mxu3 }
 0x372   :  { %v674_v22 = vmul.f32 %v671_v3, %v593_v32 }
 0x373   :  { %v565_v38 = vpop.f32.mrf.mxu0 }
 0x374   :  { %v652_v31 = vmul.f32 %v648_v21, %v565_v38  ;;  %v698_v38 = vperm.slane %v1458_v35, 6 }
 0x379   :  { %v595_v44 = vpop.f32.mrf.mxu3 }
 0x37b   :  { %v568_v50 = vpop.f32.mrf.mxu0 }
 0x37e   :  { %963 = vmatmul.msk.bf16.gmra.mxu3 %vm178_vm1, %v1262_v47  ;;  %v654_v47 = vmul.f32 %v653_v28, %v568_v50 }
 0x380   :  { %v658_v8 = vadd.f32 %v654_v47, %v649_v2 }
 0x381   :  { %v598_v23 = vpop.f32.mrf.mxu3 }
 0x382   :  { %v681_v59 = vmul.f32 %v680_v25, %v598_v23 }
 0x383   :  { %v570_v29 = vpop.f32.mrf.mxu0 }
 0x384   :  { %v655_v39 = vmul.f32 %v653_v28, %v570_v29  ;;  %v675_v29 = vmul.f32 %v671_v3, %v595_v44 }
 0x386   :  { %v659_v56 = vadd.f32 %v655_v39, %v650_v36 }
 0x389   :  { %v600_v58 = vpop.f32.mrf.mxu3 }
 0x38a   :  { %v682_v53 = vmul.f32 %v680_v25, %v600_v58 }
 0x38b   :  { %v573_v4 = vpop.f32.mrf.mxu0 }
 0x38c   :  { %v656_v45 = vmul.f32 %v653_v28, %v573_v4 }
 0x38e   :  { %964 = vmatmul.msk.bf16.gmra.mxu3 %vm178_vm1, %v1282_v55  ;;  %v660_v1 = vadd.f32 %v656_v45, %v651_v51 }
 0x391   :  { %v603_v41 = vpop.f32.mrf.mxu3 }
 0x392   :  { %v683_v62 = vmul.f32 %v680_v25, %v603_v41 }
 0x393   :  { %v575_v34 = vpop.f32.mrf.mxu0 }
 0x394   :  { %v657_v13 = vmul.f32 %v653_v28, %v575_v34 }
 0x396   :  { %v661_v14 = vadd.f32 %v657_v13, %v652_v31 }
 0x399   :  { %v605_v15 = vpop.f32.mrf.mxu3 }
 0x39a   :  { %v684_v4 = vmul.f32 %v680_v25, %v605_v15  ;;  %v707_v15 = vperm.slane %v1458_v35, 7  ;;  %v1471_v25 = vld [vmem:[%s1526_s5 + $0x18] sm:$0xff] }
 0x39b   :  { %v578_v55 = vpop.f32.mrf.mxu0  ;;  %v968_v35 = vld [vmem:[%s1527_s6 + $0x38] sm:$0xff] }
 0x39c   :  { %v663_v37 = vmul.f32 %v662_v43, %v578_v55 }
 0x39e   :  { %v667_v60 = vadd.f32 %v663_v37, %v658_v8 }
 0x3a0   :  { %v676_v42 = vadd.f32 %v672_v30, %v667_v60 }
 0x3a1   :  { %v608_v33 = vpop.f32.mrf.mxu3 }
 0x3a2   :  { %v685_v10 = vadd.f32 %v681_v59, %v676_v42  ;;  %v690_v46 = vmul.f32 %v689_v40, %v608_v33  ;;  %v716_v59 = vperm.slane %v1471_v25, 0 }
 0x3a3   :  { %v580_v16 = vpop.f32.mrf.mxu0 }
 0x3a4   :  { %v694_v48 = vadd.f32 %v690_v46, %v685_v10  ;;  %v664_v24 = vmul.f32 %v662_v43, %v580_v16  ;;  %v725_v10 = vperm.slane %v1471_v25, 1 }
 0x3a6   :  { %v668_v54 = vadd.f32 %v664_v24, %v659_v56 }
 0x3a8   :  { %v677_v57 = vadd.f32 %v673_v49, %v668_v54 }
 0x3a9   :  { %v610_v61 = vpop.f32.mrf.mxu3 }
 0x3aa   :  { %v686_v63 = vadd.f32 %v682_v53, %v677_v57  ;;  %v691_v27 = vmul.f32 %v689_v40, %v610_v61  ;;  %v965_v57 = vld [vmem:[%s1527_s6 + $0x20] sm:$0xff]  ;;  %v966_v61 = vld [vmem:[%s1527_s6 + $0x28] sm:$0xff] }
 0x3ab   :  { %v583_v7 = vpop.f32.mrf.mxu0 }
 0x3ac   :  { %v695_v6 = vadd.f32 %v691_v27, %v686_v63  ;;  %v665_v52 = vmul.f32 %v662_v43, %v583_v7  ;;  %v787_v7 = vpack.c.bf16 %v966_v61, %v965_v57 }
 0x3ae   :  { %v669_v9 = vadd.f32 %v665_v52, %v660_v1 }
 0x3b0   :  { %v678_v5 = vadd.f32 %v674_v22, %v669_v9 }
 0x3b1   :  { %v613_v11 = vpop.f32.mrf.mxu3 }
 0x3b2   :  { %v687_v17 = vadd.f32 %v683_v62, %v678_v5  ;;  %v692_v20 = vmul.f32 %v689_v40, %v613_v11 }
 0x3b3   :  { %v585_v26 = vpop.f32.mrf.mxu0 }
 0x3b4   :  { %v696_v50 = vadd.f32 %v692_v20, %v687_v17  ;;  %v666_v23 = vmul.f32 %v662_v43, %v585_v26 }
 0x3b6   :  { %v670_v58 = vadd.f32 %v666_v23, %v661_v14 }
 0x3b8   :  { %v679_v2 = vadd.f32 %v675_v29, %v670_v58 }
 0x3b9   :  { %v615_v47 = vpop.f32.mrf.mxu3 }
 0x3ba   :  { %v688_v8 = vadd.f32 %v684_v4, %v679_v2  ;;  %v693_v55 = vmul.f32 %v689_v40, %v615_v47 }
 0x3bc   :  { %v697_v32 = vadd.f32 %v693_v55, %v688_v8 }
 0x3c1   :  { %v618_v21 = vpop.f32.mrf.mxu3 }
 0x3c2   :  { %v699_v41 = vmul.f32 %v698_v38, %v618_v21 }
 0x3c4   :  { %v703_v28 = vadd.f32 %v699_v41, %v694_v48  ;;  %v967_v48 = vld [vmem:[%s1527_s6 + $0x30] sm:$0xff] }
 0x3c5   :  { %v788_v51 = vpack.c.bf16 %v968_v35, %v967_v48 }
 0x3c7   :  { %802 = vmatpush.bf16.msra.mxu2 %v788_v51 }
 0x3c9   :  { %v620_v34 = vpop.f32.mrf.mxu3 }
 0x3ca   :  { %v700_v46 = vmul.f32 %v698_v38, %v620_v34 }
 0x3cb   :  { %803 = vmatpush.bf16.msra.mxu2 %v787_v7 }
 0x3cc   :  { %v704_v45 = vadd.f32 %v700_v46, %v695_v6 }
 0x3d1   :  { %v623_v37 = vpop.f32.mrf.mxu3 }
 0x3d2   :  { %v701_v30 = vmul.f32 %v698_v38, %v623_v37 }
 0x3d4   :  { %v705_v36 = vadd.f32 %v701_v30, %v696_v50 }
 0x3d9   :  { %v625_v39 = vpop.f32.mrf.mxu3 }
 0x3da   :  { %v702_v20 = vmul.f32 %v698_v38, %v625_v39 }
 0x3dc   :  { %v706_v2 = vadd.f32 %v702_v20, %v697_v32 }
 0x3e1   :  { %v628_v60 = vpop.f32.mrf.mxu3 }
 0x3e2   :  { %v708_v40 = vmul.f32 %v707_v15, %v628_v60 }
 0x3e4   :  { %v712_v33 = vadd.f32 %v708_v40, %v703_v28 }
 0x3e9   :  { %v630_v43 = vpop.f32.mrf.mxu3 }
 0x3ea   :  { %v709_v24 = vmul.f32 %v707_v15, %v630_v43  ;;  %v766_v43 = vperm.slane %v1471_v25, 2 }
 0x3ec   :  { %v713_v1 = vadd.f32 %v709_v24, %v704_v45 }
 0x3f1   :  { %v633_v44 = vpop.f32.mrf.mxu3 }
 0x3f2   :  { %v710_v31 = vmul.f32 %v707_v15, %v633_v44 }
 0x3f4   :  { %v714_v11 = vadd.f32 %v710_v31, %v705_v36 }
 0x3f9   :  { %v635_v3 = vpop.f32.mrf.mxu3 }
 0x3fa   :  { %v711_v23 = vmul.f32 %v707_v15, %v635_v3 }
 0x3fc   :  { %v715_v41 = vadd.f32 %v711_v23, %v706_v2 }
 0x401   :  { %v638_v42 = vpop.f32.mrf.mxu3 }
 0x402   :  { %v717_v56 = vmul.f32 %v716_v59, %v638_v42 }
 0x404   :  { %v721_v16 = vadd.f32 %v717_v56, %v712_v33  ;;  %v771_v56 = vperm.slane %v1471_v25, 3 }
 0x406   :  { %v726_v49 = vadd.f32 %v725_v10, %v721_v16 }
 0x408   :  { %v730_v54 = vmul.f32 %v726_v49, %v726_v49 }
 0x409   :  { %v640_v53 = vpop.f32.mrf.mxu3 }
 0x40a   :  { %v734_v63 = vmul.f32 %v730_v54, %v726_v49  ;;  %v718_v27 = vmul.f32 %v716_v59, %v640_v53 }
 0x40c   :  { %v738_v52 = vmul.f32 0.044715, %v734_v63  ;;  %v722_v22 = vadd.f32 %v718_v27, %v713_v1 }
 0x40e   :  { %v742_v6 = vadd.f32 %v738_v52, %v726_v49  ;;  %v727_v13 = vadd.f32 %v725_v10, %v722_v22 }
 0x410   :  { %v746_v9 = vmul.f32 0.7978846, %v742_v6  ;;  %v731_v62 = vmul.f32 %v727_v13, %v727_v13 }
 0x411   :  { %v643_v5 = vpop.f32.mrf.mxu3 }
 0x412   :  { %1003 = vtanh.f32 %v746_v9  ;;  %v735_v14 = vmul.f32 %v731_v62, %v727_v13  ;;  %v719_v17 = vmul.f32 %v716_v59, %v643_v5  ;;  %v789_v62 = vperm.slane %v1471_v25, 4 }
 0x414   :  { %v739_v26 = vmul.f32 0.044715, %v735_v14  ;;  %v723_v50 = vadd.f32 %v719_v17, %v714_v11 }
 0x416   :  { %v743_v29 = vadd.f32 %v739_v26, %v727_v13  ;;  %v728_v58 = vadd.f32 %v725_v10, %v723_v50 }
 0x418   :  { %v1004_v4 = vpop.eup %1003  ;;  %v747_v47 = vmul.f32 0.7978846, %v743_v29  ;;  %v732_v8 = vmul.f32 %v728_v58, %v728_v58 }
 0x419   :  { %v754_v55 = vadd.f32 1.0, %v1004_v4  ;;  %v645_v21 = vpop.f32.mrf.mxu3 }
 0x41a   :  { %1005 = vtanh.f32 %v747_v47  ;;  %v736_v28 = vmul.f32 %v732_v8, %v728_v58  ;;  %v720_v34 = vmul.f32 %v716_v59, %v645_v21 }
 0x41b   :  { %v758_v37 = vmul.f32 0.5, %v754_v55 }
 0x41c   :  { %v740_v30 = vmul.f32 0.044715, %v736_v28  ;;  %v724_v36 = vadd.f32 %v720_v34, %v715_v41 }
 0x41d   :  { %v762_v39 = vmul.f32 %v758_v37, %v726_v49 }
 0x41e   :  { %v744_v60 = vadd.f32 %v740_v30, %v728_v58  ;;  %v729_v38 = vadd.f32 %v725_v10, %v724_v36 }
 0x41f   :  { %v767_v42 = vmul.f32 %v766_v43, %v762_v39 }
 0x420   :  { %v1006_v44 = vpop.eup %1005  ;;  %v748_v3 = vmul.f32 0.7978846, %v744_v60  ;;  %v733_v15 = vmul.f32 %v729_v38, %v729_v38 }
 0x421   :  { %v755_v32 = vadd.f32 1.0, %v1006_v44  ;;  %v772_v35 = vadd.f32 %v771_v56, %v767_v42 }
 0x422   :  { %1007 = vtanh.f32 %v748_v3  ;;  %v737_v40 = vmul.f32 %v733_v15, %v729_v38 }
 0x423   :  { %v759_v33 = vmul.f32 0.5, %v755_v32  ;;  %v776_v45 = vadd.f32 %v772_v35, %v1415_v0  ;;  %v851_v35 = vperm.slane %v1471_v25, 5 }
 0x424   :  { %v741_v46 = vmul.f32 0.044715, %v737_v40 }
 0x425   :  { %v763_v59 = vmul.f32 %v759_v33, %v727_v13 }
 0x426   :  { %v745_v16 = vadd.f32 %v741_v46, %v729_v38 }
 0x427   :  { %v768_v48 = vmul.f32 %v766_v43, %v763_v59 }
 0x428   :  { %v1008_v24 = vpop.eup %1007  ;;  %v749_v10 = vmul.f32 0.7978846, %v745_v16 }
 0x429   :  { %v773_v49 = vadd.f32 %v771_v56, %v768_v48  ;;  %v756_v51 = vadd.f32 1.0, %v1008_v24 }
 0x42a   :  { %1009 = vtanh.f32 %v749_v10 }
 0x42b   :  { %v777_v54 = vadd.f32 %v773_v49, %v1413_v19  ;;  %v760_v53 = vmul.f32 0.5, %v756_v51 }
 0x42d   :  { %v785_v57 = vpack.c.bf16 %v777_v54, %v776_v45  ;;  %v764_v61 = vmul.f32 %v760_v53, %v728_v58  ;;  %v856_v54 = vperm.slane %v1471_v25, 6  ;;  %v861_v25 = vld [vmem:[%s1523_s2] sm:$0x3] }
 0x42f   :  { %969 = vmatmul.msk.bf16.vlgmr.msra.gmra.mxu2 %vm178_vm1, %v785_v57  ;;  %v769_v7 = vmul.f32 %v766_v43, %v764_v61 }
 0x430   :  { %v1010_v1 = vpop.eup %1009 }
 0x431   :  { %v757_v63 = vadd.f32 1.0, %v1010_v1  ;;  %v774_v31 = vadd.f32 %v771_v56, %v769_v7  ;;  %v883_v7 = vld [vmem:[%s1528_s7 + $0x10] sm:$0xff] }
 0x433   :  { %v761_v27 = vmul.f32 0.5, %v757_v63  ;;  %v778_v13 = vadd.f32 %v774_v31, %v1407_v18 }
 0x435   :  { %v765_v52 = vmul.f32 %v761_v27, %v729_v38 }
 0x437   :  { %v770_v22 = vmul.f32 %v766_v43, %v765_v52  ;;  %v884_v52 = vld [vmem:[%s1528_s7 + $0x18] sm:$0xff] }
 0x438   :  { %v888_v31 = vpack.c.bf16 %v884_v52, %v883_v7 }
 0x439   :  { %v775_v6 = vadd.f32 %v771_v56, %v770_v22 }
 0x43b   :  { %v779_v9 = vadd.f32 %v775_v6, %v1409_v12 }
 0x43d   :  { %v786_v0 = vpack.c.bf16 %v779_v9, %v778_v13  ;;  %v862_v13 = vpack.c.bf16 %v861_v25, %v861_v25  ;;  %v881_v9 = vld [vmem:[%s1528_s7] sm:$0xff] }
 0x43f   :  { %970 = vmatmul.msk.bf16.gmra.mxu2 %vm178_vm1, %v786_v0  ;;  %v882_v0 = vld [vmem:[%s1528_s7 + $0x8] sm:$0xff] }
 0x4b2   :  { %v805_v19 = vpop.f32.mrf.mxu2 }
 0x4b3   :  { %v806_v5 = vadd.f32 %v805_v19, %v789_v62  ;;  %v887_v19 = vpack.c.bf16 %v882_v0, %v881_v9 }
 0x4b5   :  { %v815_v17 = vmul.f32 %v806_v5, %v806_v5 }
 0x4b7   :  { %v819_v50 = vmul.f32 %v815_v17, %v806_v5 }
 0x4b9   :  { %v823_v4 = vmul.f32 0.044715, %v819_v50 }
 0x4ba   :  { %v807_v11 = vpop.f32.mrf.mxu2 }
 0x4bb   :  { %v808_v14 = vadd.f32 %v807_v11, %v789_v62  ;;  %v827_v47 = vadd.f32 %v823_v4, %v806_v5 }
 0x4bd   :  { %v816_v20 = vmul.f32 %v808_v14, %v808_v14  ;;  %v831_v34 = vmul.f32 0.7978846, %v827_v47 }
 0x4bf   :  { %v820_v26 = vmul.f32 %v816_v20, %v808_v14 }
 0x4c1   :  { %v824_v23 = vmul.f32 0.044715, %v820_v26 }
 0x4c2   :  { %v810_v29 = vpop.f32.mrf.mxu2 }
 0x4c3   :  { %v811_v58 = vadd.f32 %v810_v29, %v789_v62  ;;  %v828_v2 = vadd.f32 %v824_v23, %v808_v14 }
 0x4c5   :  { %v817_v18 = vmul.f32 %v811_v58, %v811_v58  ;;  %v832_v55 = vmul.f32 0.7978846, %v828_v2 }
 0x4c7   :  { %v821_v12 = vmul.f32 %v817_v18, %v811_v58  ;;  %1011 = vtanh.f32 %v832_v55 }
 0x4c9   :  { %v825_v8 = vmul.f32 0.044715, %v821_v12 }
 0x4ca   :  { %v812_v21 = vpop.f32.mrf.mxu2 }
 0x4cb   :  { %v829_v41 = vadd.f32 %v825_v8, %v811_v58  ;;  %v813_v28 = vadd.f32 %v812_v21, %v789_v62 }
 0x4cd   :  { %v833_v37 = vmul.f32 0.7978846, %v829_v41  ;;  %v818_v30 = vmul.f32 %v813_v28, %v813_v28  ;;  %v1012_v39 = vpop.eup %1011 }
 0x4ce   :  { %v840_v32 = vadd.f32 1.0, %v1012_v39 }
 0x4cf   :  { %1013 = vtanh.f32 %v833_v37  ;;  %v822_v36 = vmul.f32 %v818_v30, %v813_v28 }
 0x4d0   :  { %1015 = vtanh.f32 %v831_v34  ;;  %v844_v33 = vmul.f32 0.5, %v840_v32 }
 0x4d1   :  { %v826_v60 = vmul.f32 0.044715, %v822_v36 }
 0x4d2   :  { %v848_v48 = vmul.f32 %v844_v33, %v808_v14  ;;  %v978_v14 = vld [vmem:[%s1528_s7 + $0x20] ss:$0 sm:$0xff] }
 0x4d3   :  { %v830_v38 = vadd.f32 %v826_v60, %v813_v28 }
 0x4d4   :  { %v853_v53 = vmul.f32 %v851_v35, %v848_v48 }
 0x4d5   :  { %v1014_v43 = vpop.eup %1013  ;;  %v834_v44 = vmul.f32 0.7978846, %v830_v38 }
 0x4d6   :  { %v841_v3 = vadd.f32 1.0, %v1014_v43  ;;  %v1016_v15 = vpop.eup %1015  ;;  %v858_v27 = vadd.f32 %v856_v54, %v853_v53 }
 0x4d7   :  { %1017 = vtanh.f32 %v834_v44  ;;  %v839_v40 = vadd.f32 1.0, %v1016_v15 }
 0x4d8   :  { %v845_v42 = vmul.f32 0.5, %v841_v3 }
 0x4d9   :  { %v843_v46 = vmul.f32 0.5, %v839_v40 }
 0x4da   :  { %v849_v59 = vmul.f32 %v845_v42, %v811_v58 }
 0x4db   :  { %v847_v10 = vmul.f32 %v843_v46, %v806_v5 }
 0x4dc   :  { %v854_v49 = vmul.f32 %v851_v35, %v849_v59 }
 0x4dd   :  { %v1018_v56 = vpop.eup %1017  ;;  %v852_v1 = vmul.f32 %v851_v35, %v847_v10 }
 0x4de   :  { %v842_v16 = vadd.f32 1.0, %v1018_v56  ;;  %v859_v57 = vadd.f32 %v856_v54, %v854_v49 }
 0x4df   :  { %v857_v22 = vadd.f32 %v856_v54, %v852_v1 }
 0x4e0   :  { %v846_v24 = vmul.f32 0.5, %v842_v16 }
 0x4e1   :  { %v863_v6 = vpack.c.bf16 %v858_v27, %v857_v22 }
 0x4e2   :  { %v850_v51 = vmul.f32 %v846_v24, %v813_v28 }
 0x4e4   :  { %v855_v45 = vmul.f32 %v851_v35, %v850_v51 }
 0x4e6   :  { %v860_v61 = vadd.f32 %v856_v54, %v855_v45 }
 0x4e8   :  { %v864_v63 = vpack.c.bf16 %v860_v61, %v859_v57 }
 0x4ea   :  { %874 = vmatpush.bf16.msra.mxu0 %v864_v63 }
 0x4ee   :  { %875 = vmatpush.bf16.msra.mxu0 %v863_v6 }
 0x4f1   :  { %971 = vmatmul.msk.bf16.vlgmr.msra.gmra.mxu0 %vm178_vm1, %v862_v13 }
 0x4f2   :  { %899 = vmatpush.bf16.msrb.mxu0 %v888_v31 }
 0x4f6   :  { %900 = vmatpush.bf16.msrb.mxu0 %v887_v19 }
 0x56e   :  { %v877_v62 = vpop.f32.mrf.mxu0 }
 0x56f   :  { %v886_v5 = vpack.c.bf16 %v877_v62, %v877_v62 }
 0x571   :  { %972 = vmatmul.msk.bf16.vlgmr.msrb.gmra.mxu0 %vm178_vm1, %v886_v5 }
 0x576   :  { %v879_v11 = vpop.f32.mrf.mxu0 }
 0x5ee   :  { %v902_v17 = vpop.f32.mrf.mxu0 }
 0x5ef   :  { %v903_v20 = vadd.f32 %v978_v14, %v902_v17 }
 0x5f1   :  { %906 = vst [vmem:[#allocation2] sm:$0x3] %v903_v20 }
 0x5f2   :  { %917 = dma.vmem_to_hbm [thread:$0]  %s913_s28, 32, %s915_s9, [#allocation3]  }
 0x5f6   :  { %v904_v26 = vpop.f32.mrf.mxu0 }
 0x5f7   :  { %1043 = dma.done.wait [#allocation3], 32  }
 0x5f8   :  { %1044 = vsyncadd [#allocation3], 4294967264 }
 0x5f9   :  { %922 = vsyncpa [#allocation3], 1 }

</bundles_post_ra>
